<compile_context>
chip_gen: v7x
topology: tpu7x:2x2x1
jax: 0.10.0
libtpu: 0.0.40
codegen_flags: <defaults>
</compile_context>

<pallas_src>
import functools

import jax
import jax.numpy as jnp
from jax import lax
from jax.experimental import pallas as pl
from jax.experimental.pallas import tpu as pltpu

RELU6_MAX = 6.0


# ------------------------------ fused kernel ------------------------------- #

def _fused_block_kernel(*refs, stride, th, h_in, w_in, use_res, has_expand):
    """One (batch sample, output-row tile): expand -> depthwise 3x3 -> project.

    refs = (x, [w_exp, b_exp], w_dw, b_dw, w_proj, b_proj, out, hbuf)
      x    : (H, W, Cin)        full input rows of this sample (VMEM, revisited)
      w_*  : BN-scale-folded weights (compute dtype), b_* biases (fp32)
      out  : (TH, W_out, Cout)  output row tile
      hbuf : (R, W+2, Cmid)     VMEM scratch holding the zero-padded hidden rows
    """
    if has_expand:
        (x_ref, wexp_ref, bexp_ref, wdw_ref, bdw_ref,
         wproj_ref, bproj_ref, o_ref, hbuf_ref) = refs
    else:
        (x_ref, wdw_ref, bdw_ref,
         wproj_ref, bproj_ref, o_ref, hbuf_ref) = refs

    t = pl.program_id(1)
    out_row0 = t * th                       # first output row of this tile
    r_extent = (th - 1) * stride + 3        # padded hidden rows this tile needs
    w_out = (w_in - 1) // stride + 1
    cmid = hbuf_ref.shape[-1]
    store_dtype = hbuf_ref.dtype

    # Zero the left/right padding columns of the hidden buffer (in VMEM only).
    zero_col = jnp.zeros((r_extent, 1, cmid), store_dtype)
    hbuf_ref[:, 0:1, :] = zero_col
    hbuf_ref[:, w_in + 1:w_in + 2, :] = zero_col

    # ---- stage 1: 1x1 expand conv (+folded-BN bias, ReLU6) into padded VMEM --
    # Halo rows above/below the image are masked to zero (the conv's padding).
    for p in range(r_extent):
        r = out_row0 * stride - 1 + p                   # hidden/input row index
        valid = jnp.logical_and(r >= 0, r < h_in).astype(jnp.float32)
        xrow = x_ref[jnp.clip(r, 0, h_in - 1)]          # (W, Cin)
        if has_expand:
            hrow = jnp.dot(xrow, wexp_ref[...],
                           preferred_element_type=jnp.float32)
            hrow = jnp.clip(hrow + bexp_ref[...], 0.0, RELU6_MAX)
        else:                                           # expand_ratio == 1
            hrow = xrow.astype(jnp.float32)
        hbuf_ref[p, 1:w_in + 1, :] = (hrow * valid).astype(store_dtype)

    # ---- stage 2: 3x3 depthwise conv (+bias, ReLU6), fp32 accumulation -------
    # TODO(synk): for stride==2 a W-phase-split layout would avoid the
    # sublane-strided tap slices (perf only; results are correct either way).
    hpad = hbuf_ref[...].astype(jnp.float32)            # (R, W+2, Cmid)
    acc = jnp.zeros((th, w_out, cmid), jnp.float32)
    for ky in range(3):
        for kx in range(3):
            xs = hpad[ky:ky + (th - 1) * stride + 1:stride,
                      kx:kx + (w_out - 1) * stride + 1:stride, :]
            acc = acc + xs * wdw_ref[ky, kx, :].astype(jnp.float32)
    dwa = jnp.clip(acc + bdw_ref[...], 0.0, RELU6_MAX)

    # ---- stage 3: 1x1 project conv (+bias) and optional residual -------------
    mdim = th * w_out
    y = jnp.dot(dwa.reshape(mdim, cmid).astype(wproj_ref.dtype), wproj_ref[...],
                preferred_element_type=jnp.float32)
    y = y + bproj_ref[...]
    if use_res:                                      # stride==1 and Cin==Cout
        res = x_ref[pl.ds(out_row0, th), :, :]
        y = y + res.reshape(mdim, -1).astype(jnp.float32)
    o_ref[...] = y.reshape(th, w_out, -1).astype(o_ref.dtype)


# ------------------------------- wrappers ----------------------------------- #

def _fold_bn(params, expand_ratio, compute_dtype):
    """Fold BN scale into the conv weights; kernel epilogues become '+ bias'."""
    f = {}
    if expand_ratio != 1:
        f["w_exp"] = (params["w_exp"] * params["s_exp"]).astype(compute_dtype)
        f["b_exp"] = params["b_exp"].astype(jnp.float32)
    f["w_dw"] = (params["w_dw"] * params["s_dw"]).astype(compute_dtype)
    f["b_dw"] = params["b_dw"].astype(jnp.float32)
    f["w_proj"] = (params["w_proj"] * params["s_proj"]).astype(compute_dtype)
    f["b_proj"] = params["b_proj"].astype(jnp.float32)
    return f


def inverted_residual_forward_nhwc(x, folded, stride, expand_ratio, *,
                                   row_tile=8, compute_dtype=jnp.float32):
    """Fused InvertedResidual forward in NHWC (single pallas_call)."""
    n, h, w, cin = x.shape
    cmid = folded["w_dw"].shape[-1]
    cout = folded["w_proj"].shape[1]
    h_out = (h - 1) // stride + 1
    w_out = (w - 1) // stride + 1
    use_res = (stride == 1) and (cin == cout)
    has_expand = expand_ratio != 1

    # Output-row tile: largest divisor of H_out that is <= row_tile.  The hidden
    # activation for one tile is only (R, W+2, Cmid) in VMEM; re-budget this
    # against the 32 MiB scoped VMEM on v7x for production resolutions.
    th = min(row_tile, h_out)
    while h_out % th:
        th -= 1
    r_ext = (th - 1) * stride + 3

    x = x.astype(compute_dtype)
    kernel = functools.partial(_fused_block_kernel, stride=stride, th=th,
                               h_in=h, w_in=w, use_res=use_res,
                               has_expand=has_expand)

    def _full(shape):  # whole-array block (weights / biases stay resident)
        return pl.BlockSpec(shape, lambda ni, ti: (0,) * len(shape))

    # The per-sample input block is indexed only by the batch axis, so Pallas
    # revisits it across the row-tile axis: one input DMA per sample.
    in_specs = [pl.BlockSpec((None, h, w, cin), lambda ni, ti: (ni, 0, 0, 0))]
    inputs = [x]
    if has_expand:
        in_specs += [_full((cin, cmid)), _full((1, cmid))]
        inputs += [folded["w_exp"], folded["b_exp"]]
    in_specs += [_full((3, 3, cmid)), _full((1, cmid)),
                 _full((cmid, cout)), _full((1, cout))]
    inputs += [folded["w_dw"], folded["b_dw"], folded["w_proj"], folded["b_proj"]]

    return pl.pallas_call(
        kernel,
        grid=(n, h_out // th),
        in_specs=in_specs,
        out_specs=pl.BlockSpec((None, th, w_out, cout),
                               lambda ni, ti: (ni, ti, 0, 0)),
        out_shape=jax.ShapeDtypeStruct((n, h_out, w_out, cout), compute_dtype),
        scratch_shapes=[pltpu.VMEM((r_ext, w + 2, cmid), compute_dtype)],
        compiler_params=pltpu.CompilerParams(
            dimension_semantics=("parallel", "parallel")),
    )(*inputs)


def inverted_residual_forward(x_nchw, params, stride, expand_ratio, *,
                              compute_dtype=jnp.float32, row_tile=8):
    """PyTorch-interface wrapper (NCHW in / NCHW out).

    NOTE: in a full network keep activations NHWC end-to-end and call
    inverted_residual_forward_nhwc directly; the transposes here only adapt
    the NCHW interface (perf review: hoist them out of the per-block path).
    """
    assert stride in (1, 2)
    folded = _fold_bn(params, expand_ratio, compute_dtype)
    x = jnp.transpose(x_nchw, (0, 2, 3, 1))
    y = inverted_residual_forward_nhwc(x, folded, stride, expand_ratio,
                                       row_tile=row_tile,
                                       compute_dtype=compute_dtype)
    return jnp.transpose(y, (0, 3, 1, 2))


# --------------------------- params + references ---------------------------- #

def init_params(key, inp, oup, expand_ratio, eps=1e-5):
    hidden = int(round(inp * expand_ratio))
    ks = jax.random.split(key, 16)

    def bn_fold(k0, k1, k2, k3, c):
        gamma = 1.0 + 0.1 * jax.random.normal(k0, (c,))
        beta = 0.1 * jax.random.normal(k1, (c,))
        mean = 0.1 * jax.random.normal(k2, (c,))
        var = jnp.abs(jax.random.normal(k3, (c,))) + 0.5
        scale = gamma / jnp.sqrt(var + eps)
        bias = beta - mean * scale
        return (scale.reshape(1, c).astype(jnp.float32),
                bias.reshape(1, c).astype(jnp.float32))

    params = {}
    if expand_ratio != 1:
        params["w_exp"] = (0.1 * jax.random.normal(ks[0], (inp, hidden))).astype(jnp.float32)
        params["s_exp"], params["b_exp"] = bn_fold(ks[1], ks[2], ks[3], ks[4], hidden)
    params["w_dw"] = (0.1 * jax.random.normal(ks[5], (3, 3, hidden))).astype(jnp.float32)
    params["s_dw"], params["b_dw"] = bn_fold(ks[6], ks[7], ks[8], ks[9], hidden)
    params["w_proj"] = (0.1 * jax.random.normal(ks[10], (hidden, oup))).astype(jnp.float32)
    params["s_proj"], params["b_proj"] = bn_fold(ks[11], ks[12], ks[13], ks[14], oup)
    return params


def reference_forward(x_nchw, params, stride, expand_ratio):
    """Pure-JAX fp32 reference with *unfolded* BN (ground truth for fp32 runs)."""
    x = jnp.transpose(x_nchw, (0, 2, 3, 1)).astype(jnp.float32)

    def bn(y, s, b):
        return y * s.reshape(1, 1, 1, -1) + b.reshape(1, 1, 1, -1)

    h = x
    if expand_ratio != 1:
        h = jnp.einsum("nhwc,cd->nhwd", x, params["w_exp"])
        h = jnp.clip(bn(h, params["s_exp"], params["b_exp"]), 0.0, RELU6_MAX)
    c = h.shape[-1]
    dw = params["w_dw"].reshape(3, 3, 1, c)
    h = lax.conv_general_dilated(
        h, dw, (stride, stride), padding=((1, 1), (1, 1)),
        dimension_numbers=("NHWC", "HWIO", "NHWC"), feature_group_count=c)
    h = jnp.clip(bn(h, params["s_dw"], params["b_dw"]), 0.0, RELU6_MAX)
    y = jnp.einsum("nhwc,cd->nhwd", h, params["w_proj"])
    y = bn(y, params["s_proj"], params["b_proj"])
    if stride == 1 and x.shape[-1] == y.shape[-1]:
        y = y + x
    return jnp.transpose(y, (0, 3, 1, 2))


def reference_forward_matched(x_nchw, folded, stride, expand_ratio, compute_dtype):
    """Reference mirroring the kernel's folded weights and dtype-cast points
    (used for the bfloat16 check)."""
    x = jnp.transpose(x_nchw, (0, 2, 3, 1)).astype(compute_dtype)
    h = x
    if expand_ratio != 1:
        h = jnp.einsum("nhwc,cd->nhwd", x, folded["w_exp"],
                       preferred_element_type=jnp.float32)
        h = jnp.clip(h + folded["b_exp"].reshape(1, 1, 1, -1), 0.0, RELU6_MAX)
        h = h.astype(compute_dtype)
    c = h.shape[-1]
    dw_w = folded["w_dw"].astype(jnp.float32).reshape(3, 3, 1, c)
    dw = lax.conv_general_dilated(
        h.astype(jnp.float32), dw_w, (stride, stride),
        padding=((1, 1), (1, 1)),
        dimension_numbers=("NHWC", "HWIO", "NHWC"), feature_group_count=c)
    dw = jnp.clip(dw + folded["b_dw"].reshape(1, 1, 1, -1), 0.0, RELU6_MAX)
    y = jnp.einsum("nhwc,cd->nhwd", dw.astype(compute_dtype), folded["w_proj"],
                   preferred_element_type=jnp.float32)
    y = y + folded["b_proj"].reshape(1, 1, 1, -1)
    if stride == 1 and x.shape[-1] == y.shape[-1]:
        y = y + x.astype(jnp.float32)
    return jnp.transpose(y.astype(compute_dtype), (0, 3, 1, 2))


# ----------------------------------- main ------------------------------------ #

if __name__ == "__main__":
    root_key = jax.random.PRNGKey(0)

    def run_case(case_id, inp, oup, stride, expand, n=2, hw=16,
                 compute_dtype=jnp.float32, atol=1e-3, rtol=1e-3):
        k_x, k_p = jax.random.split(jax.random.fold_in(root_key, case_id))
        x = jax.random.normal(k_x, (n, inp, hw, hw), dtype=jnp.float32)
        params = init_params(k_p, inp, oup, expand)
        out = jax.block_until_ready(
            inverted_residual_forward(x, params, stride, expand,
                                      compute_dtype=compute_dtype))
        h_out = (hw - 1) // stride + 1
        assert out.shape == (n, oup, h_out, h_out), (case_id, out.shape)
        if compute_dtype == jnp.float32:
            ref = reference_forward(x, params, stride, expand)
        else:
            folded = _fold_bn(params, expand, compute_dtype)
            ref = reference_forward_matched(x, folded, stride, expand,
                                            compute_dtype)
        out_f = out.astype(jnp.float32)
        ref_f = ref.astype(jnp.float32)
        assert jnp.allclose(out_f, ref_f, atol=atol, rtol=rtol), \
            (case_id, float(jnp.max(jnp.abs(out_f - ref_f))))

    # 1) residual path: stride=1, inp==oup, expand_ratio=4 (fp32, tight check)
    run_case(0, inp=8, oup=8, stride=1, expand=4)
    # 2) channel-changing projection (no residual), fp32
    run_case(1, inp=8, oup=16, stride=1, expand=4)
    # 3) expand_ratio == 1 variant (depthwise -> project only), fp32
    run_case(2, inp=16, oup=16, stride=1, expand=1)
    # 4) bfloat16 activations/weights with fp32 accumulation (v6e/v7x HBM win)
    run_case(3, inp=8, oup=8, stride=1, expand=4,
             compute_dtype=jnp.bfloat16, atol=1e-2, rtol=1e-2)
    # stride=2 is supported by the kernel (strided depthwise taps) but the demo
    # exercises the stride=1 configurations above.

    print("KERNEL_OK")
</pallas_src>

<mosaic_0001>
module attributes {stable_mosaic.version = 11 : i64} {
  func.func @_fused_block_kernel(%arg0: i32, %arg1: i32, %arg2: memref<1x16x16x8xf32, #tpu.memory_space<vmem>>, %arg3: memref<8x32xf32, #tpu.memory_space<vmem>>, %arg4: memref<1x32xf32, #tpu.memory_space<vmem>>, %arg5: memref<3x3x32xf32, #tpu.memory_space<vmem>>, %arg6: memref<1x32xf32, #tpu.memory_space<vmem>>, %arg7: memref<32x8xf32, #tpu.memory_space<vmem>>, %arg8: memref<1x8xf32, #tpu.memory_space<vmem>>, %arg9: memref<1x8x16x8xf32, #tpu.memory_space<vmem>>, %arg10: memref<10x18x32xf32, #tpu.memory_space<vmem>>) attributes {dimension_semantics = [#tpu.dimension_semantics<parallel>, #tpu.dimension_semantics<parallel>], iteration_bounds = array<i64: 2, 2>, scalar_prefetch = 0 : i64, scratch_operands = 1 : i64, tpu.core_type = #tpu.core_type<tc>, window_params = [{transform_indices = @transform_0, window_bounds = array<i64: 1, 16, 16, 8>}, {pipeline_mode = #tpu.pipeline_mode<synchronous>, transform_indices = @transform_1, window_bounds = array<i64: 8, 32>}, {pipeline_mode = #tpu.pipeline_mode<synchronous>, transform_indices = @transform_2, window_bounds = array<i64: 1, 32>}, {pipeline_mode = #tpu.pipeline_mode<synchronous>, transform_indices = @transform_3, window_bounds = array<i64: 3, 3, 32>}, {pipeline_mode = #tpu.pipeline_mode<synchronous>, transform_indices = @transform_4, window_bounds = array<i64: 1, 32>}, {pipeline_mode = #tpu.pipeline_mode<synchronous>, transform_indices = @transform_5, window_bounds = array<i64: 32, 8>}, {pipeline_mode = #tpu.pipeline_mode<synchronous>, transform_indices = @transform_6, window_bounds = array<i64: 1, 8>}, {transform_indices = @transform_7, window_bounds = array<i64: 1, 8, 16, 8>}]} {
    %c8_i32 = arith.constant 8 : i32
    %0 = arith.muli %arg1, %c8_i32 : i32
    %cst = arith.constant 0.000000e+00 : f32
    %1 = vector.broadcast %cst : f32 to vector<10x1x32xf32>
    %c0 = arith.constant 0 : index
    %c0_0 = arith.constant 0 : index
    %c0_1 = arith.constant 0 : index
    %2 = vector.load %arg10[%c0, %c0_0, %c0_1] : memref<10x18x32xf32, #tpu.memory_space<vmem>>, vector<10x1x32xf32>
    tpu.vector_store %arg10[%c0, %c0_0, %c0_1], %1 {strides = array<i32>} : memref<10x18x32xf32, #tpu.memory_space<vmem>>, vector<10x1x32xf32>,
    %c0_2 = arith.constant 0 : index
    %c17 = arith.constant 17 : index
    %c0_3 = arith.constant 0 : index
    %3 = vector.load %arg10[%c0_2, %c17, %c0_3] : memref<10x18x32xf32, #tpu.memory_space<vmem>>, vector<10x1x32xf32>
    tpu.vector_store %arg10[%c0_2, %c17, %c0_3], %1 {strides = array<i32>} : memref<10x18x32xf32, #tpu.memory_space<vmem>>, vector<10x1x32xf32>,
    %c1_i32 = arith.constant 1 : i32
    %4 = arith.muli %0, %c1_i32 : i32
    %c1_i32_4 = arith.constant 1 : i32
    %5 = arith.subi %4, %c1_i32_4 : i32
    %c0_i32 = arith.constant 0 : i32
    %6 = arith.addi %5, %c0_i32 : i32
    %c0_i32_5 = arith.constant 0 : i32
    %7 = arith.cmpi sge, %6, %c0_i32_5 : i32
    %c16_i32 = arith.constant 16 : i32
    %8 = arith.cmpi slt, %6, %c16_i32 : i32
    %9 = arith.andi %7, %8 : i1
    %10 = arith.extui %9 : i1 to i32
    %11 = arith.sitofp %10 : i32 to f32
    %c0_i32_6 = arith.constant 0 : i32
    %c15_i32 = arith.constant 15 : i32
    %12 = arith.maxsi %c0_i32_6, %6 : i32
    %13 = arith.minsi %c15_i32, %12 : i32
    %c0_7 = arith.constant 0 : index
    %14 = arith.index_cast %13 : i32 to index
    %c0_8 = arith.constant 0 : index
    %c0_9 = arith.constant 0 : index
    %15 = vector.load %arg2[%c0_7, %14, %c0_8, %c0_9] : memref<1x16x16x8xf32, #tpu.memory_space<vmem>>, vector<1x1x16x8xf32>
    %16 = vector.shape_cast %15 : vector<1x1x16x8xf32> to vector<16x8xf32>
    %c0_10 = arith.constant 0 : index
    %c0_11 = arith.constant 0 : index
    %17 = vector.load %arg3[%c0_10, %c0_11] : memref<8x32xf32, #tpu.memory_space<vmem>>, vector<8x32xf32>
    %cst_12 = arith.constant dense<0.000000e+00> : vector<16x32xf32>
    %18 = tpu.matmul %16, %17, %cst_12 {dimension_numbers = #tpu.dot_dimension_numbers<[1], [0], [0], [1], [0, 0, 1, 1], [], []>} : vector<16x8xf32>, vector<8x32xf32>, vector<16x32xf32> -> vector<16x32xf32>
    %c0_13 = arith.constant 0 : index
    %c0_14 = arith.constant 0 : index
    %19 = vector.load %arg4[%c0_13, %c0_14] : memref<1x32xf32, #tpu.memory_space<vmem>>, vector<1x32xf32>
    %20 = vector.broadcast %19 : vector<1x32xf32> to vector<16x32xf32>
    %21 = arith.addf %18, %20 : vector<16x32xf32>
    %cst_15 = arith.constant 0.000000e+00 : f32
    %cst_16 = arith.constant 6.000000e+00 : f32
    %22 = vector.broadcast %cst_15 : f32 to vector<16x32xf32>
    %23 = arith.maximumf %22, %21 : vector<16x32xf32>
    %24 = vector.broadcast %cst_16 : f32 to vector<16x32xf32>
    %25 = arith.minimumf %24, %23 : vector<16x32xf32>
    %26 = vector.broadcast %11 : f32 to vector<16x32xf32>
    %27 = arith.mulf %25, %26 : vector<16x32xf32>
    %c0_17 = arith.constant 0 : index
    %c1 = arith.constant 1 : index
    %c0_18 = arith.constant 0 : index
    %28 = vector.load %arg10[%c0_17, %c1, %c0_18] : memref<10x18x32xf32, #tpu.memory_space<vmem>>, vector<1x16x32xf32>
    %29 = vector.shape_cast %28 : vector<1x16x32xf32> to vector<16x32xf32>
    %30 = vector.shape_cast %27 : vector<16x32xf32> to vector<1x16x32xf32>
    tpu.vector_store %arg10[%c0_17, %c1, %c0_18], %30 {strides = array<i32>} : memref<10x18x32xf32, #tpu.memory_space<vmem>>, vector<1x16x32xf32>,
    %c1_i32_19 = arith.constant 1 : i32
    %31 = arith.muli %0, %c1_i32_19 : i32
    %c1_i32_20 = arith.constant 1 : i32
    %32 = arith.subi %31, %c1_i32_20 : i32
    %c1_i32_21 = arith.constant 1 : i32
    %33 = arith.addi %32, %c1_i32_21 : i32
    %c0_i32_22 = arith.constant 0 : i32
    %34 = arith.cmpi sge, %33, %c0_i32_22 : i32
    %c16_i32_23 = arith.constant 16 : i32
    %35 = arith.cmpi slt, %33, %c16_i32_23 : i32
    %36 = arith.andi %34, %35 : i1
    %37 = arith.extui %36 : i1 to i32
    %38 = arith.sitofp %37 : i32 to f32
    %c0_i32_24 = arith.constant 0 : i32
    %c15_i32_25 = arith.constant 15 : i32
    %39 = arith.maxsi %c0_i32_24, %33 : i32
    %40 = arith.minsi %c15_i32_25, %39 : i32
    %c0_26 = arith.constant 0 : index
    %41 = arith.index_cast %40 : i32 to index
    %c0_27 = arith.constant 0 : index
    %c0_28 = arith.constant 0 : index
    %42 = vector.load %arg2[%c0_26, %41, %c0_27, %c0_28] : memref<1x16x16x8xf32, #tpu.memory_space<vmem>>, vector<1x1x16x8xf32>
    %43 = vector.shape_cast %42 : vector<1x1x16x8xf32> to vector<16x8xf32>
    %c0_29 = arith.constant 0 : index
    %c0_30 = arith.constant 0 : index
    %44 = vector.load %arg3[%c0_29, %c0_30] : memref<8x32xf32, #tpu.memory_space<vmem>>, vector<8x32xf32>
    %cst_31 = arith.constant dense<0.000000e+00> : vector<16x32xf32>
    %45 = tpu.matmul %43, %44, %cst_31 {dimension_numbers = #tpu.dot_dimension_numbers<[1], [0], [0], [1], [0, 0, 1, 1], [], []>} : vector<16x8xf32>, vector<8x32xf32>, vector<16x32xf32> -> vector<16x32xf32>
    %c0_32 = arith.constant 0 : index
    %c0_33 = arith.constant 0 : index
    %46 = vector.load %arg4[%c0_32, %c0_33] : memref<1x32xf32, #tpu.memory_space<vmem>>, vector<1x32xf32>
    %47 = vector.broadcast %46 : vector<1x32xf32> to vector<16x32xf32>
    %48 = arith.addf %45, %47 : vector<16x32xf32>
    %cst_34 = arith.constant 0.000000e+00 : f32
    %cst_35 = arith.constant 6.000000e+00 : f32
    %49 = vector.broadcast %cst_34 : f32 to vector<16x32xf32>
    %50 = arith.maximumf %49, %48 : vector<16x32xf32>
    %51 = vector.broadcast %cst_35 : f32 to vector<16x32xf32>
    %52 = arith.minimumf %51, %50 : vector<16x32xf32>
    %53 = vector.broadcast %38 : f32 to vector<16x32xf32>
    %54 = arith.mulf %52, %53 : vector<16x32xf32>
    %c1_36 = arith.constant 1 : index
    %c1_37 = arith.constant 1 : index
    %c0_38 = arith.constant 0 : index
    %55 = vector.load %arg10[%c1_36, %c1_37, %c0_38] : memref<10x18x32xf32, #tpu.memory_space<vmem>>, vector<1x16x32xf32>
    %56 = vector.shape_cast %55 : vector<1x16x32xf32> to vector<16x32xf32>
    %57 = vector.shape_cast %54 : vector<16x32xf32> to vector<1x16x32xf32>
    tpu.vector_store %arg10[%c1_36, %c1_37, %c0_38], %57 {strides = array<i32>} : memref<10x18x32xf32, #tpu.memory_space<vmem>>, vector<1x16x32xf32>,
    %c1_i32_39 = arith.constant 1 : i32
    %58 = arith.muli %0, %c1_i32_39 : i32
    %c1_i32_40 = arith.constant 1 : i32
    %59 = arith.subi %58, %c1_i32_40 : i32
    %c2_i32 = arith.constant 2 : i32
    %60 = arith.addi %59, %c2_i32 : i32
    %c0_i32_41 = arith.constant 0 : i32
    %61 = arith.cmpi sge, %60, %c0_i32_41 : i32
    %c16_i32_42 = arith.constant 16 : i32
    %62 = arith.cmpi slt, %60, %c16_i32_42 : i32
    %63 = arith.andi %61, %62 : i1
    %64 = arith.extui %63 : i1 to i32
    %65 = arith.sitofp %64 : i32 to f32
    %c0_i32_43 = arith.constant 0 : i32
    %c15_i32_44 = arith.constant 15 : i32
    %66 = arith.maxsi %c0_i32_43, %60 : i32
    %67 = arith.minsi %c15_i32_44, %66 : i32
    %c0_45 = arith.constant 0 : index
    %68 = arith.index_cast %67 : i32 to index
    %c0_46 = arith.constant 0 : index
    %c0_47 = arith.constant 0 : index
    %69 = vector.load %arg2[%c0_45, %68, %c0_46, %c0_47] : memref<1x16x16x8xf32, #tpu.memory_space<vmem>>, vector<1x1x16x8xf32>
    %70 = vector.shape_cast %69 : vector<1x1x16x8xf32> to vector<16x8xf32>
    %c0_48 = arith.constant 0 : index
    %c0_49 = arith.constant 0 : index
    %71 = vector.load %arg3[%c0_48, %c0_49] : memref<8x32xf32, #tpu.memory_space<vmem>>, vector<8x32xf32>
    %cst_50 = arith.constant dense<0.000000e+00> : vector<16x32xf32>
    %72 = tpu.matmul %70, %71, %cst_50 {dimension_numbers = #tpu.dot_dimension_numbers<[1], [0], [0], [1], [0, 0, 1, 1], [], []>} : vector<16x8xf32>, vector<8x32xf32>, vector<16x32xf32> -> vector<16x32xf32>
    %c0_51 = arith.constant 0 : index
    %c0_52 = arith.constant 0 : index
    %73 = vector.load %arg4[%c0_51, %c0_52] : memref<1x32xf32, #tpu.memory_space<vmem>>, vector<1x32xf32>
    %74 = vector.broadcast %73 : vector<1x32xf32> to vector<16x32xf32>
    %75 = arith.addf %72, %74 : vector<16x32xf32>
    %cst_53 = arith.constant 0.000000e+00 : f32
    %cst_54 = arith.constant 6.000000e+00 : f32
    %76 = vector.broadcast %cst_53 : f32 to vector<16x32xf32>
    %77 = arith.maximumf %76, %75 : vector<16x32xf32>
    %78 = vector.broadcast %cst_54 : f32 to vector<16x32xf32>
    %79 = arith.minimumf %78, %77 : vector<16x32xf32>
    %80 = vector.broadcast %65 : f32 to vector<16x32xf32>
    %81 = arith.mulf %79, %80 : vector<16x32xf32>
    %c2 = arith.constant 2 : index
    %c1_55 = arith.constant 1 : index
    %c0_56 = arith.constant 0 : index
    %82 = vector.load %arg10[%c2, %c1_55, %c0_56] : memref<10x18x32xf32, #tpu.memory_space<vmem>>, vector<1x16x32xf32>
    %83 = vector.shape_cast %82 : vector<1x16x32xf32> to vector<16x32xf32>
    %84 = vector.shape_cast %81 : vector<16x32xf32> to vector<1x16x32xf32>
    tpu.vector_store %arg10[%c2, %c1_55, %c0_56], %84 {strides = array<i32>} : memref<10x18x32xf32, #tpu.memory_space<vmem>>, vector<1x16x32xf32>,
    %c1_i32_57 = arith.constant 1 : i32
    %85 = arith.muli %0, %c1_i32_57 : i32
    %c1_i32_58 = arith.constant 1 : i32
    %86 = arith.subi %85, %c1_i32_58 : i32
    %c3_i32 = arith.constant 3 : i32
    %87 = arith.addi %86, %c3_i32 : i32
    %c0_i32_59 = arith.constant 0 : i32
    %88 = arith.cmpi sge, %87, %c0_i32_59 : i32
    %c16_i32_60 = arith.constant 16 : i32
    %89 = arith.cmpi slt, %87, %c16_i32_60 : i32
    %90 = arith.andi %88, %89 : i1
    %91 = arith.extui %90 : i1 to i32
    %92 = arith.sitofp %91 : i32 to f32
    %c0_i32_61 = arith.constant 0 : i32
    %c15_i32_62 = arith.constant 15 : i32
    %93 = arith.maxsi %c0_i32_61, %87 : i32
    %94 = arith.minsi %c15_i32_62, %93 : i32
    %c0_63 = arith.constant 0 : index
    %95 = arith.index_cast %94 : i32 to index
    %c0_64 = arith.constant 0 : index
    %c0_65 = arith.constant 0 : index
    %96 = vector.load %arg2[%c0_63, %95, %c0_64, %c0_65] : memref<1x16x16x8xf32, #tpu.memory_space<vmem>>, vector<1x1x16x8xf32>
    %97 = vector.shape_cast %96 : vector<1x1x16x8xf32> to vector<16x8xf32>
    %c0_66 = arith.constant 0 : index
    %c0_67 = arith.constant 0 : index
    %98 = vector.load %arg3[%c0_66, %c0_67] : memref<8x32xf32, #tpu.memory_space<vmem>>, vector<8x32xf32>
    %cst_68 = arith.constant dense<0.000000e+00> : vector<16x32xf32>
    %99 = tpu.matmul %97, %98, %cst_68 {dimension_numbers = #tpu.dot_dimension_numbers<[1], [0], [0], [1], [0, 0, 1, 1], [], []>} : vector<16x8xf32>, vector<8x32xf32>, vector<16x32xf32> -> vector<16x32xf32>
    %c0_69 = arith.constant 0 : index
    %c0_70 = arith.constant 0 : index
    %100 = vector.load %arg4[%c0_69, %c0_70] : memref<1x32xf32, #tpu.memory_space<vmem>>, vector<1x32xf32>
    %101 = vector.broadcast %100 : vector<1x32xf32> to vector<16x32xf32>
    %102 = arith.addf %99, %101 : vector<16x32xf32>
    %cst_71 = arith.constant 0.000000e+00 : f32
    %cst_72 = arith.constant 6.000000e+00 : f32
    %103 = vector.broadcast %cst_71 : f32 to vector<16x32xf32>
    %104 = arith.maximumf %103, %102 : vector<16x32xf32>
    %105 = vector.broadcast %cst_72 : f32 to vector<16x32xf32>
    %106 = arith.minimumf %105, %104 : vector<16x32xf32>
    %107 = vector.broadcast %92 : f32 to vector<16x32xf32>
    %108 = arith.mulf %106, %107 : vector<16x32xf32>
    %c3 = arith.constant 3 : index
    %c1_73 = arith.constant 1 : index
    %c0_74 = arith.constant 0 : index
    %109 = vector.load %arg10[%c3, %c1_73, %c0_74] : memref<10x18x32xf32, #tpu.memory_space<vmem>>, vector<1x16x32xf32>
    %110 = vector.shape_cast %109 : vector<1x16x32xf32> to vector<16x32xf32>
    %111 = vector.shape_cast %108 : vector<16x32xf32> to vector<1x16x32xf32>
    tpu.vector_store %arg10[%c3, %c1_73, %c0_74], %111 {strides = array<i32>} : memref<10x18x32xf32, #tpu.memory_space<vmem>>, vector<1x16x32xf32>,
    %c1_i32_75 = arith.constant 1 : i32
    %112 = arith.muli %0, %c1_i32_75 : i32
    %c1_i32_76 = arith.constant 1 : i32
    %113 = arith.subi %112, %c1_i32_76 : i32
    %c4_i32 = arith.constant 4 : i32
    %114 = arith.addi %113, %c4_i32 : i32
    %c0_i32_77 = arith.constant 0 : i32
    %115 = arith.cmpi sge, %114, %c0_i32_77 : i32
    %c16_i32_78 = arith.constant 16 : i32
    %116 = arith.cmpi slt, %114, %c16_i32_78 : i32
    %117 = arith.andi %115, %116 : i1
    %118 = arith.extui %117 : i1 to i32
    %119 = arith.sitofp %118 : i32 to f32
    %c0_i32_79 = arith.constant 0 : i32
    %c15_i32_80 = arith.constant 15 : i32
    %120 = arith.maxsi %c0_i32_79, %114 : i32
    %121 = arith.minsi %c15_i32_80, %120 : i32
    %c0_81 = arith.constant 0 : index
    %122 = arith.index_cast %121 : i32 to index
    %c0_82 = arith.constant 0 : index
    %c0_83 = arith.constant 0 : index
    %123 = vector.load %arg2[%c0_81, %122, %c0_82, %c0_83] : memref<1x16x16x8xf32, #tpu.memory_space<vmem>>, vector<1x1x16x8xf32>
    %124 = vector.shape_cast %123 : vector<1x1x16x8xf32> to vector<16x8xf32>
    %c0_84 = arith.constant 0 : index
    %c0_85 = arith.constant 0 : index
    %125 = vector.load %arg3[%c0_84, %c0_85] : memref<8x32xf32, #tpu.memory_space<vmem>>, vector<8x32xf32>
    %cst_86 = arith.constant dense<0.000000e+00> : vector<16x32xf32>
    %126 = tpu.matmul %124, %125, %cst_86 {dimension_numbers = #tpu.dot_dimension_numbers<[1], [0], [0], [1], [0, 0, 1, 1], [], []>} : vector<16x8xf32>, vector<8x32xf32>, vector<16x32xf32> -> vector<16x32xf32>
    %c0_87 = arith.constant 0 : index
    %c0_88 = arith.constant 0 : index
    %127 = vector.load %arg4[%c0_87, %c0_88] : memref<1x32xf32, #tpu.memory_space<vmem>>, vector<1x32xf32>
    %128 = vector.broadcast %127 : vector<1x32xf32> to vector<16x32xf32>
    %129 = arith.addf %126, %128 : vector<16x32xf32>
    %cst_89 = arith.constant 0.000000e+00 : f32
    %cst_90 = arith.constant 6.000000e+00 : f32
    %130 = vector.broadcast %cst_89 : f32 to vector<16x32xf32>
    %131 = arith.maximumf %130, %129 : vector<16x32xf32>
    %132 = vector.broadcast %cst_90 : f32 to vector<16x32xf32>
    %133 = arith.minimumf %132, %131 : vector<16x32xf32>
    %134 = vector.broadcast %119 : f32 to vector<16x32xf32>
    %135 = arith.mulf %133, %134 : vector<16x32xf32>
    %c4 = arith.constant 4 : index
    %c1_91 = arith.constant 1 : index
    %c0_92 = arith.constant 0 : index
    %136 = vector.load %arg10[%c4, %c1_91, %c0_92] : memref<10x18x32xf32, #tpu.memory_space<vmem>>, vector<1x16x32xf32>
    %137 = vector.shape_cast %136 : vector<1x16x32xf32> to vector<16x32xf32>
    %138 = vector.shape_cast %135 : vector<16x32xf32> to vector<1x16x32xf32>
    tpu.vector_store %arg10[%c4, %c1_91, %c0_92], %138 {strides = array<i32>} : memref<10x18x32xf32, #tpu.memory_space<vmem>>, vector<1x16x32xf32>,
    %c1_i32_93 = arith.constant 1 : i32
    %139 = arith.muli %0, %c1_i32_93 : i32
    %c1_i32_94 = arith.constant 1 : i32
    %140 = arith.subi %139, %c1_i32_94 : i32
    %c5_i32 = arith.constant 5 : i32
    %141 = arith.addi %140, %c5_i32 : i32
    %c0_i32_95 = arith.constant 0 : i32
    %142 = arith.cmpi sge, %141, %c0_i32_95 : i32
    %c16_i32_96 = arith.constant 16 : i32
    %143 = arith.cmpi slt, %141, %c16_i32_96 : i32
    %144 = arith.andi %142, %143 : i1
    %145 = arith.extui %144 : i1 to i32
    %146 = arith.sitofp %145 : i32 to f32
    %c0_i32_97 = arith.constant 0 : i32
    %c15_i32_98 = arith.constant 15 : i32
    %147 = arith.maxsi %c0_i32_97, %141 : i32
    %148 = arith.minsi %c15_i32_98, %147 : i32
    %c0_99 = arith.constant 0 : index
    %149 = arith.index_cast %148 : i32 to index
    %c0_100 = arith.constant 0 : index
    %c0_101 = arith.constant 0 : index
    %150 = vector.load %arg2[%c0_99, %149, %c0_100, %c0_101] : memref<1x16x16x8xf32, #tpu.memory_space<vmem>>, vector<1x1x16x8xf32>
    %151 = vector.shape_cast %150 : vector<1x1x16x8xf32> to vector<16x8xf32>
    %c0_102 = arith.constant 0 : index
    %c0_103 = arith.constant 0 : index
    %152 = vector.load %arg3[%c0_102, %c0_103] : memref<8x32xf32, #tpu.memory_space<vmem>>, vector<8x32xf32>
    %cst_104 = arith.constant dense<0.000000e+00> : vector<16x32xf32>
    %153 = tpu.matmul %151, %152, %cst_104 {dimension_numbers = #tpu.dot_dimension_numbers<[1], [0], [0], [1], [0, 0, 1, 1], [], []>} : vector<16x8xf32>, vector<8x32xf32>, vector<16x32xf32> -> vector<16x32xf32>
    %c0_105 = arith.constant 0 : index
    %c0_106 = arith.constant 0 : index
    %154 = vector.load %arg4[%c0_105, %c0_106] : memref<1x32xf32, #tpu.memory_space<vmem>>, vector<1x32xf32>
    %155 = vector.broadcast %154 : vector<1x32xf32> to vector<16x32xf32>
    %156 = arith.addf %153, %155 : vector<16x32xf32>
    %cst_107 = arith.constant 0.000000e+00 : f32
    %cst_108 = arith.constant 6.000000e+00 : f32
    %157 = vector.broadcast %cst_107 : f32 to vector<16x32xf32>
    %158 = arith.maximumf %157, %156 : vector<16x32xf32>
    %159 = vector.broadcast %cst_108 : f32 to vector<16x32xf32>
    %160 = arith.minimumf %159, %158 : vector<16x32xf32>
    %161 = vector.broadcast %146 : f32 to vector<16x32xf32>
    %162 = arith.mulf %160, %161 : vector<16x32xf32>
    %c5 = arith.constant 5 : index
    %c1_109 = arith.constant 1 : index
    %c0_110 = arith.constant 0 : index
    %163 = vector.load %arg10[%c5, %c1_109, %c0_110] : memref<10x18x32xf32, #tpu.memory_space<vmem>>, vector<1x16x32xf32>
    %164 = vector.shape_cast %163 : vector<1x16x32xf32> to vector<16x32xf32>
    %165 = vector.shape_cast %162 : vector<16x32xf32> to vector<1x16x32xf32>
    tpu.vector_store %arg10[%c5, %c1_109, %c0_110], %165 {strides = array<i32>} : memref<10x18x32xf32, #tpu.memory_space<vmem>>, vector<1x16x32xf32>,
    %c1_i32_111 = arith.constant 1 : i32
    %166 = arith.muli %0, %c1_i32_111 : i32
    %c1_i32_112 = arith.constant 1 : i32
    %167 = arith.subi %166, %c1_i32_112 : i32
    %c6_i32 = arith.constant 6 : i32
    %168 = arith.addi %167, %c6_i32 : i32
    %c0_i32_113 = arith.constant 0 : i32
    %169 = arith.cmpi sge, %168, %c0_i32_113 : i32
    %c16_i32_114 = arith.constant 16 : i32
    %170 = arith.cmpi slt, %168, %c16_i32_114 : i32
    %171 = arith.andi %169, %170 : i1
    %172 = arith.extui %171 : i1 to i32
    %173 = arith.sitofp %172 : i32 to f32
    %c0_i32_115 = arith.constant 0 : i32
    %c15_i32_116 = arith.constant 15 : i32
    %174 = arith.maxsi %c0_i32_115, %168 : i32
    %175 = arith.minsi %c15_i32_116, %174 : i32
    %c0_117 = arith.constant 0 : index
    %176 = arith.index_cast %175 : i32 to index
    %c0_118 = arith.constant 0 : index
    %c0_119 = arith.constant 0 : index
    %177 = vector.load %arg2[%c0_117, %176, %c0_118, %c0_119] : memref<1x16x16x8xf32, #tpu.memory_space<vmem>>, vector<1x1x16x8xf32>
    %178 = vector.shape_cast %177 : vector<1x1x16x8xf32> to vector<16x8xf32>
    %c0_120 = arith.constant 0 : index
    %c0_121 = arith.constant 0 : index
    %179 = vector.load %arg3[%c0_120, %c0_121] : memref<8x32xf32, #tpu.memory_space<vmem>>, vector<8x32xf32>
    %cst_122 = arith.constant dense<0.000000e+00> : vector<16x32xf32>
    %180 = tpu.matmul %178, %179, %cst_122 {dimension_numbers = #tpu.dot_dimension_numbers<[1], [0], [0], [1], [0, 0, 1, 1], [], []>} : vector<16x8xf32>, vector<8x32xf32>, vector<16x32xf32> -> vector<16x32xf32>
    %c0_123 = arith.constant 0 : index
    %c0_124 = arith.constant 0 : index
    %181 = vector.load %arg4[%c0_123, %c0_124] : memref<1x32xf32, #tpu.memory_space<vmem>>, vector<1x32xf32>
    %182 = vector.broadcast %181 : vector<1x32xf32> to vector<16x32xf32>
    %183 = arith.addf %180, %182 : vector<16x32xf32>
    %cst_125 = arith.constant 0.000000e+00 : f32
    %cst_126 = arith.constant 6.000000e+00 : f32
    %184 = vector.broadcast %cst_125 : f32 to vector<16x32xf32>
    %185 = arith.maximumf %184, %183 : vector<16x32xf32>
    %186 = vector.broadcast %cst_126 : f32 to vector<16x32xf32>
    %187 = arith.minimumf %186, %185 : vector<16x32xf32>
    %188 = vector.broadcast %173 : f32 to vector<16x32xf32>
    %189 = arith.mulf %187, %188 : vector<16x32xf32>
    %c6 = arith.constant 6 : index
    %c1_127 = arith.constant 1 : index
    %c0_128 = arith.constant 0 : index
    %190 = vector.load %arg10[%c6, %c1_127, %c0_128] : memref<10x18x32xf32, #tpu.memory_space<vmem>>, vector<1x16x32xf32>
    %191 = vector.shape_cast %190 : vector<1x16x32xf32> to vector<16x32xf32>
    %192 = vector.shape_cast %189 : vector<16x32xf32> to vector<1x16x32xf32>
    tpu.vector_store %arg10[%c6, %c1_127, %c0_128], %192 {strides = array<i32>} : memref<10x18x32xf32, #tpu.memory_space<vmem>>, vector<1x16x32xf32>,
    %c1_i32_129 = arith.constant 1 : i32
    %193 = arith.muli %0, %c1_i32_129 : i32
    %c1_i32_130 = arith.constant 1 : i32
    %194 = arith.subi %193, %c1_i32_130 : i32
    %c7_i32 = arith.constant 7 : i32
    %195 = arith.addi %194, %c7_i32 : i32
    %c0_i32_131 = arith.constant 0 : i32
    %196 = arith.cmpi sge, %195, %c0_i32_131 : i32
    %c16_i32_132 = arith.constant 16 : i32
    %197 = arith.cmpi slt, %195, %c16_i32_132 : i32
    %198 = arith.andi %196, %197 : i1
    %199 = arith.extui %198 : i1 to i32
    %200 = arith.sitofp %199 : i32 to f32
    %c0_i32_133 = arith.constant 0 : i32
    %c15_i32_134 = arith.constant 15 : i32
    %201 = arith.maxsi %c0_i32_133, %195 : i32
    %202 = arith.minsi %c15_i32_134, %201 : i32
    %c0_135 = arith.constant 0 : index
    %203 = arith.index_cast %202 : i32 to index
    %c0_136 = arith.constant 0 : index
    %c0_137 = arith.constant 0 : index
    %204 = vector.load %arg2[%c0_135, %203, %c0_136, %c0_137] : memref<1x16x16x8xf32, #tpu.memory_space<vmem>>, vector<1x1x16x8xf32>
    %205 = vector.shape_cast %204 : vector<1x1x16x8xf32> to vector<16x8xf32>
    %c0_138 = arith.constant 0 : index
    %c0_139 = arith.constant 0 : index
    %206 = vector.load %arg3[%c0_138, %c0_139] : memref<8x32xf32, #tpu.memory_space<vmem>>, vector<8x32xf32>
    %cst_140 = arith.constant dense<0.000000e+00> : vector<16x32xf32>
    %207 = tpu.matmul %205, %206, %cst_140 {dimension_numbers = #tpu.dot_dimension_numbers<[1], [0], [0], [1], [0, 0, 1, 1], [], []>} : vector<16x8xf32>, vector<8x32xf32>, vector<16x32xf32> -> vector<16x32xf32>
    %c0_141 = arith.constant 0 : index
    %c0_142 = arith.constant 0 : index
    %208 = vector.load %arg4[%c0_141, %c0_142] : memref<1x32xf32, #tpu.memory_space<vmem>>, vector<1x32xf32>
    %209 = vector.broadcast %208 : vector<1x32xf32> to vector<16x32xf32>
    %210 = arith.addf %207, %209 : vector<16x32xf32>
    %cst_143 = arith.constant 0.000000e+00 : f32
    %cst_144 = arith.constant 6.000000e+00 : f32
    %211 = vector.broadcast %cst_143 : f32 to vector<16x32xf32>
    %212 = arith.maximumf %211, %210 : vector<16x32xf32>
    %213 = vector.broadcast %cst_144 : f32 to vector<16x32xf32>
    %214 = arith.minimumf %213, %212 : vector<16x32xf32>
    %215 = vector.broadcast %200 : f32 to vector<16x32xf32>
    %216 = arith.mulf %214, %215 : vector<16x32xf32>
    %c7 = arith.constant 7 : index
    %c1_145 = arith.constant 1 : index
    %c0_146 = arith.constant 0 : index
    %217 = vector.load %arg10[%c7, %c1_145, %c0_146] : memref<10x18x32xf32, #tpu.memory_space<vmem>>, vector<1x16x32xf32>
    %218 = vector.shape_cast %217 : vector<1x16x32xf32> to vector<16x32xf32>
    %219 = vector.shape_cast %216 : vector<16x32xf32> to vector<1x16x32xf32>
    tpu.vector_store %arg10[%c7, %c1_145, %c0_146], %219 {strides = array<i32>} : memref<10x18x32xf32, #tpu.memory_space<vmem>>, vector<1x16x32xf32>,
    %c1_i32_147 = arith.constant 1 : i32
    %220 = arith.muli %0, %c1_i32_147 : i32
    %c1_i32_148 = arith.constant 1 : i32
    %221 = arith.subi %220, %c1_i32_148 : i32
    %c8_i32_149 = arith.constant 8 : i32
    %222 = arith.addi %221, %c8_i32_149 : i32
    %c0_i32_150 = arith.constant 0 : i32
    %223 = arith.cmpi sge, %222, %c0_i32_150 : i32
    %c16_i32_151 = arith.constant 16 : i32
    %224 = arith.cmpi slt, %222, %c16_i32_151 : i32
    %225 = arith.andi %223, %224 : i1
    %226 = arith.extui %225 : i1 to i32
    %227 = arith.sitofp %226 : i32 to f32
    %c0_i32_152 = arith.constant 0 : i32
    %c15_i32_153 = arith.constant 15 : i32
    %228 = arith.maxsi %c0_i32_152, %222 : i32
    %229 = arith.minsi %c15_i32_153, %228 : i32
    %c0_154 = arith.constant 0 : index
    %230 = arith.index_cast %229 : i32 to index
    %c0_155 = arith.constant 0 : index
    %c0_156 = arith.constant 0 : index
    %231 = vector.load %arg2[%c0_154, %230, %c0_155, %c0_156] : memref<1x16x16x8xf32, #tpu.memory_space<vmem>>, vector<1x1x16x8xf32>
    %232 = vector.shape_cast %231 : vector<1x1x16x8xf32> to vector<16x8xf32>
    %c0_157 = arith.constant 0 : index
    %c0_158 = arith.constant 0 : index
    %233 = vector.load %arg3[%c0_157, %c0_158] : memref<8x32xf32, #tpu.memory_space<vmem>>, vector<8x32xf32>
    %cst_159 = arith.constant dense<0.000000e+00> : vector<16x32xf32>
    %234 = tpu.matmul %232, %233, %cst_159 {dimension_numbers = #tpu.dot_dimension_numbers<[1], [0], [0], [1], [0, 0, 1, 1], [], []>} : vector<16x8xf32>, vector<8x32xf32>, vector<16x32xf32> -> vector<16x32xf32>
    %c0_160 = arith.constant 0 : index
    %c0_161 = arith.constant 0 : index
    %235 = vector.load %arg4[%c0_160, %c0_161] : memref<1x32xf32, #tpu.memory_space<vmem>>, vector<1x32xf32>
    %236 = vector.broadcast %235 : vector<1x32xf32> to vector<16x32xf32>
    %237 = arith.addf %234, %236 : vector<16x32xf32>
    %cst_162 = arith.constant 0.000000e+00 : f32
    %cst_163 = arith.constant 6.000000e+00 : f32
    %238 = vector.broadcast %cst_162 : f32 to vector<16x32xf32>
    %239 = arith.maximumf %238, %237 : vector<16x32xf32>
    %240 = vector.broadcast %cst_163 : f32 to vector<16x32xf32>
    %241 = arith.minimumf %240, %239 : vector<16x32xf32>
    %242 = vector.broadcast %227 : f32 to vector<16x32xf32>
    %243 = arith.mulf %241, %242 : vector<16x32xf32>
    %c8 = arith.constant 8 : index
    %c1_164 = arith.constant 1 : index
    %c0_165 = arith.constant 0 : index
    %244 = vector.load %arg10[%c8, %c1_164, %c0_165] : memref<10x18x32xf32, #tpu.memory_space<vmem>>, vector<1x16x32xf32>
    %245 = vector.shape_cast %244 : vector<1x16x32xf32> to vector<16x32xf32>
    %246 = vector.shape_cast %243 : vector<16x32xf32> to vector<1x16x32xf32>
    tpu.vector_store %arg10[%c8, %c1_164, %c0_165], %246 {strides = array<i32>} : memref<10x18x32xf32, #tpu.memory_space<vmem>>, vector<1x16x32xf32>,
    %c1_i32_166 = arith.constant 1 : i32
    %247 = arith.muli %0, %c1_i32_166 : i32
    %c1_i32_167 = arith.constant 1 : i32
    %248 = arith.subi %247, %c1_i32_167 : i32
    %c9_i32 = arith.constant 9 : i32
    %249 = arith.addi %248, %c9_i32 : i32
    %c0_i32_168 = arith.constant 0 : i32
    %250 = arith.cmpi sge, %249, %c0_i32_168 : i32
    %c16_i32_169 = arith.constant 16 : i32
    %251 = arith.cmpi slt, %249, %c16_i32_169 : i32
    %252 = arith.andi %250, %251 : i1
    %253 = arith.extui %252 : i1 to i32
    %254 = arith.sitofp %253 : i32 to f32
    %c0_i32_170 = arith.constant 0 : i32
    %c15_i32_171 = arith.constant 15 : i32
    %255 = arith.maxsi %c0_i32_170, %249 : i32
    %256 = arith.minsi %c15_i32_171, %255 : i32
    %c0_172 = arith.constant 0 : index
    %257 = arith.index_cast %256 : i32 to index
    %c0_173 = arith.constant 0 : index
    %c0_174 = arith.constant 0 : index
    %258 = vector.load %arg2[%c0_172, %257, %c0_173, %c0_174] : memref<1x16x16x8xf32, #tpu.memory_space<vmem>>, vector<1x1x16x8xf32>
    %259 = vector.shape_cast %258 : vector<1x1x16x8xf32> to vector<16x8xf32>
    %c0_175 = arith.constant 0 : index
    %c0_176 = arith.constant 0 : index
    %260 = vector.load %arg3[%c0_175, %c0_176] : memref<8x32xf32, #tpu.memory_space<vmem>>, vector<8x32xf32>
    %cst_177 = arith.constant dense<0.000000e+00> : vector<16x32xf32>
    %261 = tpu.matmul %259, %260, %cst_177 {dimension_numbers = #tpu.dot_dimension_numbers<[1], [0], [0], [1], [0, 0, 1, 1], [], []>} : vector<16x8xf32>, vector<8x32xf32>, vector<16x32xf32> -> vector<16x32xf32>
    %c0_178 = arith.constant 0 : index
    %c0_179 = arith.constant 0 : index
    %262 = vector.load %arg4[%c0_178, %c0_179] : memref<1x32xf32, #tpu.memory_space<vmem>>, vector<1x32xf32>
    %263 = vector.broadcast %262 : vector<1x32xf32> to vector<16x32xf32>
    %264 = arith.addf %261, %263 : vector<16x32xf32>
    %cst_180 = arith.constant 0.000000e+00 : f32
    %cst_181 = arith.constant 6.000000e+00 : f32
    %265 = vector.broadcast %cst_180 : f32 to vector<16x32xf32>
    %266 = arith.maximumf %265, %264 : vector<16x32xf32>
    %267 = vector.broadcast %cst_181 : f32 to vector<16x32xf32>
    %268 = arith.minimumf %267, %266 : vector<16x32xf32>
    %269 = vector.broadcast %254 : f32 to vector<16x32xf32>
    %270 = arith.mulf %268, %269 : vector<16x32xf32>
    %c9 = arith.constant 9 : index
    %c1_182 = arith.constant 1 : index
    %c0_183 = arith.constant 0 : index
    %271 = vector.load %arg10[%c9, %c1_182, %c0_183] : memref<10x18x32xf32, #tpu.memory_space<vmem>>, vector<1x16x32xf32>
    %272 = vector.shape_cast %271 : vector<1x16x32xf32> to vector<16x32xf32>
    %273 = vector.shape_cast %270 : vector<16x32xf32> to vector<1x16x32xf32>
    tpu.vector_store %arg10[%c9, %c1_182, %c0_183], %273 {strides = array<i32>} : memref<10x18x32xf32, #tpu.memory_space<vmem>>, vector<1x16x32xf32>,
    %c0_184 = arith.constant 0 : index
    %c0_185 = arith.constant 0 : index
    %c0_186 = arith.constant 0 : index
    %274 = vector.load %arg10[%c0_184, %c0_185, %c0_186] : memref<10x18x32xf32, #tpu.memory_space<vmem>>, vector<10x18x32xf32>
    %cst_187 = arith.constant 0.000000e+00 : f32
    %275 = vector.broadcast %cst_187 : f32 to vector<8x16x32xf32>
    %276 = vector.extract_strided_slice %274 {offsets = [0, 0, 0], sizes = [8, 16, 32], strides = [1, 1, 1]} : vector<10x18x32xf32> to vector<8x16x32xf32>
    %c0_188 = arith.constant 0 : index
    %c0_189 = arith.constant 0 : index
    %c0_190 = arith.constant 0 : index
    %277 = vector.load %arg5[%c0_188, %c0_189, %c0_190] : memref<3x3x32xf32, #tpu.memory_space<vmem>>, vector<1x1x32xf32>
    %278 = vector.shape_cast %277 : vector<1x1x32xf32> to vector<32xf32>
    %279 = vector.shape_cast %278 : vector<32xf32> to vector<1x1x32xf32>
    %280 = vector.broadcast %279 : vector<1x1x32xf32> to vector<8x16x32xf32>
    %281 = arith.mulf %276, %280 : vector<8x16x32xf32>
    %282 = arith.addf %275, %281 : vector<8x16x32xf32>
    %283 = vector.extract_strided_slice %274 {offsets = [0, 1, 0], sizes = [8, 16, 32], strides = [1, 1, 1]} : vector<10x18x32xf32> to vector<8x16x32xf32>
    %c0_191 = arith.constant 0 : index
    %c1_192 = arith.constant 1 : index
    %c0_193 = arith.constant 0 : index
    %284 = vector.load %arg5[%c0_191, %c1_192, %c0_193] : memref<3x3x32xf32, #tpu.memory_space<vmem>>, vector<1x1x32xf32>
    %285 = vector.shape_cast %284 : vector<1x1x32xf32> to vector<32xf32>
    %286 = vector.shape_cast %285 : vector<32xf32> to vector<1x1x32xf32>
    %287 = vector.broadcast %286 : vector<1x1x32xf32> to vector<8x16x32xf32>
    %288 = arith.mulf %283, %287 : vector<8x16x32xf32>
    %289 = arith.addf %282, %288 : vector<8x16x32xf32>
    %290 = vector.extract_strided_slice %274 {offsets = [0, 2, 0], sizes = [8, 16, 32], strides = [1, 1, 1]} : vector<10x18x32xf32> to vector<8x16x32xf32>
    %c0_194 = arith.constant 0 : index
    %c2_195 = arith.constant 2 : index
    %c0_196 = arith.constant 0 : index
    %291 = vector.load %arg5[%c0_194, %c2_195, %c0_196] : memref<3x3x32xf32, #tpu.memory_space<vmem>>, vector<1x1x32xf32>
    %292 = vector.shape_cast %291 : vector<1x1x32xf32> to vector<32xf32>
    %293 = vector.shape_cast %292 : vector<32xf32> to vector<1x1x32xf32>
    %294 = vector.broadcast %293 : vector<1x1x32xf32> to vector<8x16x32xf32>
    %295 = arith.mulf %290, %294 : vector<8x16x32xf32>
    %296 = arith.addf %289, %295 : vector<8x16x32xf32>
    %297 = vector.extract_strided_slice %274 {offsets = [1, 0, 0], sizes = [8, 16, 32], strides = [1, 1, 1]} : vector<10x18x32xf32> to vector<8x16x32xf32>
    %c1_197 = arith.constant 1 : index
    %c0_198 = arith.constant 0 : index
    %c0_199 = arith.constant 0 : index
    %298 = vector.load %arg5[%c1_197, %c0_198, %c0_199] : memref<3x3x32xf32, #tpu.memory_space<vmem>>, vector<1x1x32xf32>
    %299 = vector.shape_cast %298 : vector<1x1x32xf32> to vector<32xf32>
    %300 = vector.shape_cast %299 : vector<32xf32> to vector<1x1x32xf32>
    %301 = vector.broadcast %300 : vector<1x1x32xf32> to vector<8x16x32xf32>
    %302 = arith.mulf %297, %301 : vector<8x16x32xf32>
    %303 = arith.addf %296, %302 : vector<8x16x32xf32>
    %304 = vector.extract_strided_slice %274 {offsets = [1, 1, 0], sizes = [8, 16, 32], strides = [1, 1, 1]} : vector<10x18x32xf32> to vector<8x16x32xf32>
    %c1_200 = arith.constant 1 : index
    %c1_201 = arith.constant 1 : index
    %c0_202 = arith.constant 0 : index
    %305 = vector.load %arg5[%c1_200, %c1_201, %c0_202] : memref<3x3x32xf32, #tpu.memory_space<vmem>>, vector<1x1x32xf32>
    %306 = vector.shape_cast %305 : vector<1x1x32xf32> to vector<32xf32>
    %307 = vector.shape_cast %306 : vector<32xf32> to vector<1x1x32xf32>
    %308 = vector.broadcast %307 : vector<1x1x32xf32> to vector<8x16x32xf32>
    %309 = arith.mulf %304, %308 : vector<8x16x32xf32>
    %310 = arith.addf %303, %309 : vector<8x16x32xf32>
    %311 = vector.extract_strided_slice %274 {offsets = [1, 2, 0], sizes = [8, 16, 32], strides = [1, 1, 1]} : vector<10x18x32xf32> to vector<8x16x32xf32>
    %c1_203 = arith.constant 1 : index
    %c2_204 = arith.constant 2 : index
    %c0_205 = arith.constant 0 : index
    %312 = vector.load %arg5[%c1_203, %c2_204, %c0_205] : memref<3x3x32xf32, #tpu.memory_space<vmem>>, vector<1x1x32xf32>
    %313 = vector.shape_cast %312 : vector<1x1x32xf32> to vector<32xf32>
    %314 = vector.shape_cast %313 : vector<32xf32> to vector<1x1x32xf32>
    %315 = vector.broadcast %314 : vector<1x1x32xf32> to vector<8x16x32xf32>
    %316 = arith.mulf %311, %315 : vector<8x16x32xf32>
    %317 = arith.addf %310, %316 : vector<8x16x32xf32>
    %318 = vector.extract_strided_slice %274 {offsets = [2, 0, 0], sizes = [8, 16, 32], strides = [1, 1, 1]} : vector<10x18x32xf32> to vector<8x16x32xf32>
    %c2_206 = arith.constant 2 : index
    %c0_207 = arith.constant 0 : index
    %c0_208 = arith.constant 0 : index
    %319 = vector.load %arg5[%c2_206, %c0_207, %c0_208] : memref<3x3x32xf32, #tpu.memory_space<vmem>>, vector<1x1x32xf32>
    %320 = vector.shape_cast %319 : vector<1x1x32xf32> to vector<32xf32>
    %321 = vector.shape_cast %320 : vector<32xf32> to vector<1x1x32xf32>
    %322 = vector.broadcast %321 : vector<1x1x32xf32> to vector<8x16x32xf32>
    %323 = arith.mulf %318, %322 : vector<8x16x32xf32>
    %324 = arith.addf %317, %323 : vector<8x16x32xf32>
    %325 = vector.extract_strided_slice %274 {offsets = [2, 1, 0], sizes = [8, 16, 32], strides = [1, 1, 1]} : vector<10x18x32xf32> to vector<8x16x32xf32>
    %c2_209 = arith.constant 2 : index
    %c1_210 = arith.constant 1 : index
    %c0_211 = arith.constant 0 : index
    %326 = vector.load %arg5[%c2_209, %c1_210, %c0_211] : memref<3x3x32xf32, #tpu.memory_space<vmem>>, vector<1x1x32xf32>
    %327 = vector.shape_cast %326 : vector<1x1x32xf32> to vector<32xf32>
    %328 = vector.shape_cast %327 : vector<32xf32> to vector<1x1x32xf32>
    %329 = vector.broadcast %328 : vector<1x1x32xf32> to vector<8x16x32xf32>
    %330 = arith.mulf %325, %329 : vector<8x16x32xf32>
    %331 = arith.addf %324, %330 : vector<8x16x32xf32>
    %332 = vector.extract_strided_slice %274 {offsets = [2, 2, 0], sizes = [8, 16, 32], strides = [1, 1, 1]} : vector<10x18x32xf32> to vector<8x16x32xf32>
    %c2_212 = arith.constant 2 : index
    %c2_213 = arith.constant 2 : index
    %c0_214 = arith.constant 0 : index
    %333 = vector.load %arg5[%c2_212, %c2_213, %c0_214] : memref<3x3x32xf32, #tpu.memory_space<vmem>>, vector<1x1x32xf32>
    %334 = vector.shape_cast %333 : vector<1x1x32xf32> to vector<32xf32>
    %335 = vector.shape_cast %334 : vector<32xf32> to vector<1x1x32xf32>
    %336 = vector.broadcast %335 : vector<1x1x32xf32> to vector<8x16x32xf32>
    %337 = arith.mulf %332, %336 : vector<8x16x32xf32>
    %338 = arith.addf %331, %337 : vector<8x16x32xf32>
    %c0_215 = arith.constant 0 : index
    %c0_216 = arith.constant 0 : index
    %339 = vector.load %arg6[%c0_215, %c0_216] : memref<1x32xf32, #tpu.memory_space<vmem>>, vector<1x32xf32>
    %340 = vector.shape_cast %339 : vector<1x32xf32> to vector<1x1x32xf32>
    %341 = vector.broadcast %340 : vector<1x1x32xf32> to vector<8x16x32xf32>
    %342 = arith.addf %338, %341 : vector<8x16x32xf32>
    %cst_217 = arith.constant 0.000000e+00 : f32
    %cst_218 = arith.constant 6.000000e+00 : f32
    %343 = vector.broadcast %cst_217 : f32 to vector<8x16x32xf32>
    %344 = arith.maximumf %343, %342 : vector<8x16x32xf32>
    %345 = vector.broadcast %cst_218 : f32 to vector<8x16x32xf32>
    %346 = arith.minimumf %345, %344 : vector<8x16x32xf32>
    %347 = vector.shape_cast %346 : vector<8x16x32xf32> to vector<128x32xf32>
    %c0_219 = arith.constant 0 : index
    %c0_220 = arith.constant 0 : index
    %348 = vector.load %arg7[%c0_219, %c0_220] : memref<32x8xf32, #tpu.memory_space<vmem>>, vector<32x8xf32>
    %cst_221 = arith.constant dense<0.000000e+00> : vector<128x8xf32>
    %349 = tpu.matmul %347, %348, %cst_221 {dimension_numbers = #tpu.dot_dimension_numbers<[1], [0], [0], [1], [0, 0, 1, 1], [], []>} : vector<128x32xf32>, vector<32x8xf32>, vector<128x8xf32> -> vector<128x8xf32>
    %c0_222 = arith.constant 0 : index
    %c0_223 = arith.constant 0 : index
    %350 = vector.load %arg8[%c0_222, %c0_223] : memref<1x8xf32, #tpu.memory_space<vmem>>, vector<1x8xf32>
    %351 = vector.broadcast %350 : vector<1x8xf32> to vector<128x8xf32>
    %352 = arith.addf %349, %351 : vector<128x8xf32>
    %c0_224 = arith.constant 0 : index
    %353 = arith.index_cast %0 : i32 to index
    %c0_225 = arith.constant 0 : index
    %c0_226 = arith.constant 0 : index
    %354 = vector.load %arg2[%c0_224, %353, %c0_225, %c0_226] : memref<1x16x16x8xf32, #tpu.memory_space<vmem>>, vector<1x8x16x8xf32>
    %355 = vector.shape_cast %354 : vector<1x8x16x8xf32> to vector<8x16x8xf32>
    %356 = vector.shape_cast %355 : vector<8x16x8xf32> to vector<128x8xf32>
    %357 = arith.addf %352, %356 : vector<128x8xf32>
    %358 = vector.shape_cast %357 : vector<128x8xf32> to vector<8x16x8xf32>
    %c0_227 = arith.constant 0 : index
    %c0_228 = arith.constant 0 : index
    %c0_229 = arith.constant 0 : index
    %c0_230 = arith.constant 0 : index
    %359 = vector.load %arg9[%c0_227, %c0_228, %c0_229, %c0_230] : memref<1x8x16x8xf32, #tpu.memory_space<vmem>>, vector<1x8x16x8xf32>
    %360 = vector.shape_cast %359 : vector<1x8x16x8xf32> to vector<8x16x8xf32>
    %361 = vector.shape_cast %358 : vector<8x16x8xf32> to vector<1x8x16x8xf32>
    tpu.vector_store %arg9[%c0_227, %c0_228, %c0_229, %c0_230], %361 {strides = array<i32>} : memref<1x8x16x8xf32, #tpu.memory_space<vmem>>, vector<1x8x16x8xf32>,
    return
  }
  func.func @transform_0(%arg0: i32, %arg1: i32) -> (i32, i32, i32, i32) {
    %c0_i32 = arith.constant 0 : i32
    %c0_i32_0 = arith.constant 0 : i32
    %c0_i32_1 = arith.constant 0 : i32
    %c0_i32_2 = arith.constant 0 : i32
    return %arg0, %c0_i32, %c0_i32_0, %c0_i32_1 : i32, i32, i32, i32
  }
  func.func @transform_1(%arg0: i32, %arg1: i32) -> (i32, i32) {
    %c0_i32 = arith.constant 0 : i32
    %c0_i32_0 = arith.constant 0 : i32
    %c0_i32_1 = arith.constant 0 : i32
    return %c0_i32, %c0_i32_0 : i32, i32
  }
  func.func @transform_2(%arg0: i32, %arg1: i32) -> (i32, i32) {
    %c0_i32 = arith.constant 0 : i32
    %c0_i32_0 = arith.constant 0 : i32
    %c0_i32_1 = arith.constant 0 : i32
    return %c0_i32, %c0_i32_0 : i32, i32
  }
  func.func @transform_3(%arg0: i32, %arg1: i32) -> (i32, i32, i32) {
    %c0_i32 = arith.constant 0 : i32
    %c0_i32_0 = arith.constant 0 : i32
    %c0_i32_1 = arith.constant 0 : i32
    %c0_i32_2 = arith.constant 0 : i32
    return %c0_i32, %c0_i32_0, %c0_i32_1 : i32, i32, i32
  }
  func.func @transform_4(%arg0: i32, %arg1: i32) -> (i32, i32) {
    %c0_i32 = arith.constant 0 : i32
    %c0_i32_0 = arith.constant 0 : i32
    %c0_i32_1 = arith.constant 0 : i32
    return %c0_i32, %c0_i32_0 : i32, i32
  }
  func.func @transform_5(%arg0: i32, %arg1: i32) -> (i32, i32) {
    %c0_i32 = arith.constant 0 : i32
    %c0_i32_0 = arith.constant 0 : i32
    %c0_i32_1 = arith.constant 0 : i32
    return %c0_i32, %c0_i32_0 : i32, i32
  }
  func.func @transform_6(%arg0: i32, %arg1: i32) -> (i32, i32) {
    %c0_i32 = arith.constant 0 : i32
    %c0_i32_0 = arith.constant 0 : i32
    %c0_i32_1 = arith.constant 0 : i32
    return %c0_i32, %c0_i32_0 : i32, i32
  }
  func.func @transform_7(%arg0: i32, %arg1: i32) -> (i32, i32, i32, i32) {
    %c0_i32 = arith.constant 0 : i32
    %c0_i32_0 = arith.constant 0 : i32
    %c0_i32_1 = arith.constant 0 : i32
    return %arg0, %arg1, %c0_i32, %c0_i32_0 : i32, i32, i32, i32
  }
}

</mosaic_0001>

<bundles_post_ra>
// kernel: tpu_custom_call.1
= control target key start
LH: loop header
LB: loop body
LE: loop exit
PB: predicated region body
PF: predicated region fallthrough
CT: control target
= control target key end

     0   :  { %s3229_s24 = smov 0   ;;  %s3231_s25 = smov 0   ;;  %s4598_s0 = inlined_call_operand.vmem [shape: f32[2,16,16,8], index: 0, kind: input, shape index: {}]   ;;  %s4599_s1 = inlined_call_operand.vmem [shape: f32[8,32], index: 1, kind: input, shape index: {}]   ;;  %s4600_s2 = inlined_call_operand.vmem [shape: f32[1,32], index: 2, kind: input, shape index: {}]   ;;  %s4601_s3 = inlined_call_operand.vmem [shape: f32[3,3,32], index: 3, kind: input, shape index: {}]   ;;  %s4602_s4 = inlined_call_operand.vmem [shape: f32[1,32], index: 4, kind: input, shape index: {}]   ;;  %s4603_s5 = inlined_call_operand.vmem [shape: f32[32,8], index: 5, kind: input, shape index: {}]   ;;  %s4604_s6 = inlined_call_operand.vmem [shape: f32[1,8], index: 6, kind: input, shape index: {}]   ;;  %s4605_s7 = inlined_call_operand.vmem [shape: f32[2,16,16,8], index: 7, kind: output, shape index: {}]  }
   0x1   :  { %4607 = sst [smem:[#allocation4_spill]] %s4598_s0  ;;  %s3233_s26 = smov 0  }
   0x2   :  { %4608 = sst [smem:[#allocation5_spill]] %s4599_s1  ;;  %s3235_s27 = smov 0  }
   0x3   :  { %s3237_s28 = smov 0  }
   0x4 LB: > { %s26_s29 = sadd.s32 1, %s3178_s26  ;;  %s29_s30 = sadd.s32 1, %s3182_s27  ;;  %s3186_s28 = sphi %s3237_s28, %s17_s28   ;;  %s3182_s27 = sphi %s3235_s27, %s4628_s27   ;;  %s3178_s26 = sphi %s3233_s26, %s4627_s26   ;;  %s3174_s25 = sphi %s3231_s25, %s4626_s25   ;;  %s3170_s24 = sphi %s3229_s24, %s4625_s24  }
   0x5   : > { %p27_p0 = scmp.ge.s32.totalorder %s26_s29, 2  ;;  %p2786_p1 = scmp.ge.s32.totalorder %s3186_s28, 1 }
   0x6   : > { %p251_p2 = scmp.lt.s32.totalorder %s3186_s28, 5 }
   0x7   : > { %s4630_s29 = smov (%p27_p0, %s26_s29), 0  ;;  %s4632_s30 = smov (!%p27_p0, %s29_s30), %s3182_s27 }
   0x8   : > { %p252_p3 = pnand %p2786_p1, %p251_p2  ;;  %p31_p4 = scmp.ge.s32.totalorder %s4632_s30, 2 }
   0x9   : > { %s4610_s1 = sld [smem:[#allocation5_spill]] (!%p252_p3)  ;;  %p288_p5 = scmp.lt.s32.totalorder (!%p252_p3), %s3174_s25, 1  ;;  %vm349_vm0 = vcmask (!%p252_p3), 64512   ;;  %vm305_vm1 = vcmask (!%p252_p3), 253952   ;;  %v3188_v21 = vmov (!%p252_p3), 0.0   ;;  %v2416_v22 = vld [vmem:[%s4603_s5] sm:$0xff] (!%p252_p3) }
   0xa   : > { %s4634_s30 = smov (%p31_p4, %s4632_s30), 0  ;;  %255 = sbr.rel (%p252_p3) target bundleno = 654 (0x28e), region = 48 }
   0xb   : > { %4609 = sst [smem:[#allocation3_spill]] %s4634_s30  ;;  %s3267_s10 = sshll.u32 (!%p252_p3), %s3170_s24, 3  ;;  %311 = vst.msk [vmem:[#allocation2 + $0x78] sm:$0x1] (!%p252_p3), %vm305_vm1, %v3188_v21  ;;  %306 = vst.msk [vmem:[#allocation2] sm:$0x1] (!%p252_p3), %vm305_vm1, %v3188_v21 }
   0xc   : > { %p296_p6 = scmp.lt.s32.totalorder (!%p252_p3), %s3267_s10, 15  ;;  %p447_p7 = scmp.gt.s32.totalorder (!%p252_p3), %s3267_s10, 0  ;;  %307 = vst.msk [vmem:[#allocation2 + $0x18] sm:$0x1] (!%p252_p3), %vm305_vm1, %v3188_v21  ;;  %308 = vst.msk [vmem:[#allocation2 + $0x30] sm:$0x1] (!%p252_p3), %vm305_vm1, %v3188_v21 }
   0xd   : > { %s4611_s0 = sld [smem:[#allocation4_spill]] (!%p252_p3)  ;;  %s3288_s19 = sadd.s32 (!%p252_p3), 4294967295, %s3267_s10  ;;  %309 = vst.msk [vmem:[#allocation2 + $0x48] sm:$0x1] (!%p252_p3), %vm305_vm1, %v3188_v21  ;;  %310 = vst.msk [vmem:[#allocation2 + $0x60] sm:$0x1] (!%p252_p3), %vm305_vm1, %v3188_v21 }
   0xe   : > { %p333_p8 = scmp.gt.s32.totalorder (!%p252_p3), %s3288_s19, 0  ;;  %p2796_p9 = scmp.lt.s32.totalorder (!%p252_p3), %s3288_s19, 15  ;;  %312 = vst.msk [vmem:[#allocation2 + $0x90] sm:$0x1] (!%p252_p3), %vm305_vm1, %v3188_v21  ;;  %313 = vst.msk [vmem:[#allocation2 + $0xa8] sm:$0x1] (!%p252_p3), %vm305_vm1, %v3188_v21 }
   0xf   : > { %v3264_v0 = vld [vmem:[%s4610_s1] sm:$0xff] (!%p252_p3)  ;;  %s3297_s23 = sadd.s32 (!%p252_p3), 2, %s3267_s10  ;;  %314 = vst.msk [vmem:[#allocation2 + $0xc0] sm:$0x1] (!%p252_p3), %vm305_vm1, %v3188_v21  ;;  %315 = vst.msk [vmem:[#allocation2 + $0xd8] sm:$0x1] (!%p252_p3), %vm305_vm1, %v3188_v21 }
  0x10   : > { %3003 = vmatprep.subr.mxu0 (!%p252_p3), %v3264_v0  ;;  %3008 = vmatprep.subr.mxu1 (!%p252_p3), %v3264_v0  ;;  %p675_p10 = scmp.gt.s32.totalorder (!%p252_p3), %s3297_s23, 0  ;;  %p2826_p11 = scmp.lt.s32.totalorder (!%p252_p3), %s3297_s23, 15  ;;  %316 = vst.msk [vmem:[#allocation2 + $0x11] sm:$0x1] (!%p252_p3), %vm305_vm1, %v3188_v21  ;;  %317 = vst.msk [vmem:[#allocation2 + $0x29] sm:$0x1] (!%p252_p3), %vm305_vm1, %v3188_v21 }
  0x11   : > { %3004 = vmatpush3.msra.mxu0 %v3264_v0  ;;  %3009 = vmatpush3.msra.mxu1 %v3264_v0  ;;  %s4636_s25 = smov (!%p288_p5, %s3174_s25), 1  ;;  %318 = vst.msk [vmem:[#allocation2 + $0x41] sm:$0x1] %vm305_vm1, %v3188_v21  ;;  %319 = vst.msk [vmem:[#allocation2 + $0x59] sm:$0x1] %vm305_vm1, %v3188_v21  ;;  %v2417_v23 = vld [vmem:[%s4603_s5 + $0x8] sm:$0xff] }
  0x12   : > { %s297_s11 = scalar_select %p296_p6, %s3267_s10, 15  ;;  %3013 = vmatprep.subr.mxu0 %v3264_v0  ;;  %3018 = vmatprep.subr.mxu1 %v3264_v0  ;;  %320 = vst.msk [vmem:[#allocation2 + $0x71] sm:$0x1] %vm305_vm1, %v3188_v21  ;;  %321 = vst.msk [vmem:[#allocation2 + $0x89] sm:$0x1] %vm305_vm1, %v3188_v21  ;;  %v2418_v24 = vld [vmem:[%s4603_s5 + $0x10] sm:$0xff]  ;;  %v3085_v25 = vpack.c.bf16 %v2417_v23, %v2416_v22 }
  0x13   : > { %s2791_s12 = sshll.u32 %s4636_s25, 5  ;;  %s2931_s13 = sshll.u32 %s4636_s25, 8  ;;  %322 = vst.msk [vmem:[#allocation2 + $0xa1] sm:$0x1] %vm305_vm1, %v3188_v21  ;;  %323 = vst.msk [vmem:[#allocation2 + $0xb9] sm:$0x1] %vm305_vm1, %v3188_v21 }
  0x14   : > { %s2790_s14 = sshll.u32 %s297_s11, 1  ;;  %s3285_s18 = scalar_lea.vmem %s4611_s0, %s2931_s13  ;;  %324 = vst.msk [vmem:[#allocation2 + $0xd1] sm:$0x1] %vm305_vm1, %v3188_v21  ;;  %325 = vst.msk [vmem:[#allocation2 + $0xe9] sm:$0x1] %vm305_vm1, %v3188_v21  ;;  %v2419_v26 = vld [vmem:[%s4603_s5 + $0x18] sm:$0xff] }
  0x15   : > { %s3280_s15 = sadd.s32 %s2791_s12, %s2790_s14  ;;  %s3308_s12 = sadd.s32 1, %s3267_s10  ;;  %v3089_v27 = vpack.c.bf16 %v2419_v26, %v2418_v24  ;;  %v3479_v28 = vld [vmem:[%s4600_s2] ss:$0 sm:$0xff]  ;;  %vm438_vm2 = vcmask 261120   ;;  %v3563_v60 = vld [vmem:[%s4601_s3 + $0x1] ss:$0 sm:$0xff] }
  0x16   : > { %s448_s20 = scalar_select %p447_p7, %s3267_s10, 0  ;;  %vm1586_vm3 = vcmask 1046528   ;;  %vm1712_vm4 = vcmask 1045504  }
  0x17   : > { %s334_s21 = scalar_select %p333_p8, %s3288_s19, 0 }
  0x18   : > { %s4638_s20 = smov (!%p296_p6, %s448_s20), 15  ;;  %p561_p12 = scmp.gt.s32.totalorder %s3308_s12, 0 }
  0x19   : > { %s2811_s22 = sshll.u32 %s4638_s20, 4  ;;  %s4640_s21 = smov (!%p2796_p9, %s334_s21), 15 }
  0x1a   : > { %s452_s25 = scalar_lea.vmem %s3285_s18, %s2811_s22  ;;  %s2801_s9 = sshll.u32 %s4640_s21, 4 }
  0x1b   : > { %v453_v1 = vld [vmem:[%s452_s25] sm:$0xff]  ;;  %v454_v2 = vld [vmem:[%s452_s25 + $0x8] sm:$0xff]  ;;  %s676_s8 = scalar_select %p675_p10, %s3297_s23, 0 }
  0x1c   : > { %3010 = vmatprep.mubr.msk.f32.mxu1 %vm349_vm0, %v453_v1  ;;  %s338_s11 = scalar_lea.vmem %s3285_s18, %s2801_s9  ;;  %p2816_p13 = scmp.lt.s32.totalorder %s3308_s12, 15  ;;  %v3571_v1 = vld [vmem:[%s4601_s3 + $0x5] ss:$0 sm:$0xff] }
  0x1d   : > { %3011 = vmatmul.mubr.msk.f32.vlgmr.msra.gmra.mrb[0].mxu1 %vm349_vm0, %v454_v2  ;;  %v339_v3 = vld [vmem:[%s338_s11] sm:$0xff]  ;;  %v340_v4 = vld [vmem:[%s338_s11 + $0x8] sm:$0xff]  ;;  %s4642_s8 = smov (!%p2826_p11, %s676_s8), 15  ;;  %s3316_s14 = sadd.s32 4, %s3267_s10 }
  0x1e   : > { %3019 = vmatpush3.msra.mxu1 %v3264_v0  ;;  %3005 = vmatprep.mubr.msk.f32.mxu0 %vm349_vm0, %v339_v3  ;;  %s2831_s13 = sshll.u32 %s4642_s8, 4  ;;  %p903_p0 = scmp.gt.s32.totalorder %s3316_s14, 0  ;;  %v3576_v2 = vld [vmem:[%s4601_s3 + $0x6] ss:$0 sm:$0xff] }
  0x1f   : > { %3028 = vmatprep.subr.mxu1 %v3264_v0  ;;  %3006 = vmatmul.mubr.msk.f32.vlgmr.msra.gmra.mrb[0].mxu0 %vm349_vm0, %v340_v4  ;;  %s680_s16 = scalar_lea.vmem %s3285_s18, %s2831_s13  ;;  %p2846_p1 = scmp.lt.s32.totalorder %s3316_s14, 15 }
  0x20   : > { %3014 = vmatpush3.msra.mxu0 %v3264_v0  ;;  %v681_v5 = vld [vmem:[%s680_s16] sm:$0xff]  ;;  %v682_v6 = vld [vmem:[%s680_s16 + $0x8] sm:$0xff]  ;;  %s562_s17 = scalar_select %p561_p12, %s3308_s12, 0 }
  0x21   : > { %3023 = vmatprep.subr.mxu0 %v3264_v0  ;;  %3020 = vmatprep.mubr.msk.f32.mxu1 %vm349_vm0, %v681_v5  ;;  %s904_s20 = scalar_select %p903_p0, %s3316_s14, 0 }
  0x22   : > { %s4644_s17 = smov (!%p2816_p13, %s562_s17), 15  ;;  %3021 = vmatmul.mubr.msk.f32.vlgmr.msra.gmra.mrb[2].mxu1 %vm349_vm0, %v682_v6  ;;  %s3329_s21 = sadd.s32 3, %s3267_s10 }
  0x23   : > { %3029 = vmatpush3.msra.mxu1 %v3264_v0  ;;  %s2821_s22 = sshll.u32 %s4644_s17, 4  ;;  %p789_p2 = scmp.gt.s32.totalorder %s3329_s21, 0 }
  0x24   : > { %3038 = vmatprep.subr.mxu1 %v3264_v0  ;;  %s566_s25 = scalar_lea.vmem %s3285_s18, %s2821_s22  ;;  %p2836_p3 = scmp.lt.s32.totalorder %s3329_s21, 15 }
  0x25   : > { %v567_v7 = vld [vmem:[%s566_s25] sm:$0xff]  ;;  %v568_v8 = vld [vmem:[%s566_s25 + $0x8] sm:$0xff]  ;;  %s4646_s20 = smov (!%p2846_p1, %s904_s20), 15  ;;  %s3339_s11 = sadd.s32 5, %s3267_s10 }
  0x26   : > { %3015 = vmatprep.mubr.msk.f32.mxu0 %vm349_vm0, %v567_v7  ;;  %s790_s8 = scalar_select %p789_p2, %s3329_s21, 0 }
  0x27   : > { %3016 = vmatmul.mubr.msk.f32.vlgmr.msra.gmra.mrb[2].mxu0 %vm349_vm0, %v568_v8  ;;  %s2851_s9 = sshll.u32 %s4646_s20, 4  ;;  %p1017_p4 = scmp.gt.s32.totalorder %s3339_s11, 0  ;;  %v3584_v8 = vld [vmem:[%s4601_s3 + $0x4] ss:$0 sm:$0xff] }
  0x28   : > { %3024 = vmatpush3.msra.mxu0 %v3264_v0  ;;  %s908_s13 = scalar_lea.vmem %s3285_s18, %s2851_s9  ;;  %s4648_s8 = smov (!%p2836_p3, %s790_s8), 15 }
  0x29   : > { %v909_v9 = vld [vmem:[%s908_s13] sm:$0xff]  ;;  %v910_v10 = vld [vmem:[%s908_s13 + $0x8] sm:$0xff]  ;;  %3033 = vmatprep.subr.mxu0 %v3264_v0  ;;  %s1018_s16 = scalar_select %p1017_p4, %s3339_s11, 0 }
  0x2a   : > { %3030 = vmatprep.mubr.msk.f32.mxu1 %vm349_vm0, %v909_v9  ;;  %s2841_s17 = sshll.u32 %s4648_s8, 4  ;;  %p2856_p5 = scmp.lt.s32.totalorder %s3339_s11, 15 }
  0x2b   : > { %3031 = vmatmul.mubr.msk.f32.vlgmr.msra.gmra.mrb[4].mxu1 %vm349_vm0, %v910_v10  ;;  %s794_s20 = scalar_lea.vmem %s3285_s18, %s2841_s17  ;;  %s3354_s22 = sadd.s32 6, %s3267_s10 }
  0x2c   : > { %3039 = vmatpush3.msra.mxu1 %v3264_v0  ;;  %v795_v11 = vld [vmem:[%s794_s20] sm:$0xff]  ;;  %v796_v12 = vld [vmem:[%s794_s20 + $0x8] sm:$0xff]  ;;  %s4650_s16 = smov (!%p2856_p5, %s1018_s16), 15  ;;  %p1131_p6 = scmp.gt.s32.totalorder %s3354_s22, 0 }
  0x2d   : > { %3048 = vmatprep.subr.mxu1 %v3264_v0  ;;  %3025 = vmatprep.mubr.msk.f32.mxu0 %vm349_vm0, %v795_v11  ;;  %p2866_p7 = scmp.lt.s32.totalorder %s3354_s22, 15  ;;  %s2861_s25 = sshll.u32 %s4650_s16, 4 }
  0x2e   : > { %3026 = vmatmul.mubr.msk.f32.vlgmr.msra.gmra.mrb[4].mxu0 %vm349_vm0, %v796_v12  ;;  %s3362_s8 = sadd.s32 7, %s3267_s10  ;;  %s1022_s9 = scalar_lea.vmem %s3285_s18, %s2861_s25 }
  0x2f   : > { %3034 = vmatpush3.msra.mxu0 %v3264_v0  ;;  %p1245_p8 = scmp.gt.s32.totalorder %s3362_s8, 0  ;;  %v1023_v13 = vld [vmem:[%s1022_s9] sm:$0xff]  ;;  %v1024_v14 = vld [vmem:[%s1022_s9 + $0x8] sm:$0xff]  ;;  %p2876_p9 = scmp.lt.s32.totalorder %s3362_s8, 15 }
  0x30   : > { %s1132_s13 = scalar_select %p1131_p6, %s3354_s22, 0  ;;  %3043 = vmatprep.subr.mxu0 %v3264_v0  ;;  %3035 = vmatprep.mubr.msk.f32.mxu0 %vm349_vm0, %v1023_v13 }
  0x31   : > { %s1246_s17 = scalar_select %p1245_p8, %s3362_s8, 0 }
  0x32   : > { %3036 = vmatmul.mubr.msk.f32.vlgmr.msra.gmra.mrb[6].mxu0 %vm349_vm0, %v1024_v14  ;;  %s4652_s13 = smov (!%p2866_p7, %s1132_s13), 15  ;;  %s3377_s16 = sadd.s32 8, %s3267_s10 }
  0x33   : > { %3044 = vmatpush3.msra.mxu0 %v3264_v0  ;;  %s2871_s20 = sshll.u32 %s4652_s13, 4  ;;  %p1359_p10 = scmp.gt.s32.totalorder %s3377_s16, 0 }
  0x34   : > { %s1136_s25 = scalar_lea.vmem %s3285_s18, %s2871_s20  ;;  %p2886_p11 = scmp.lt.s32.totalorder %s3377_s16, 15  ;;  %3086 = vmatprep.subr.bf16.mxu0 %v3085_v25 }
  0x35   : > { %v1137_v15 = vld [vmem:[%s1136_s25] sm:$0xff]  ;;  %v1138_v16 = vld [vmem:[%s1136_s25 + $0x8] sm:$0xff]  ;;  %s4654_s17 = smov (!%p2876_p9, %s1246_s17), 15  ;;  %p441_p12 = scmp.ge.s32.totalorder %s3267_s10, 0 }
  0x36   : > { %3040 = vmatprep.mubr.msk.f32.mxu1 %vm349_vm0, %v1137_v15  ;;  %s1360_s9 = scalar_select %p1359_p10, %s3377_s16, 0 }
  0x37   : > { %3041 = vmatmul.mubr.msk.f32.vlgmr.msra.gmra.mrb[6].mxu1 %vm349_vm0, %v1138_v16  ;;  %s2881_s0 = sshll.u32 %s4654_s17, 4  ;;  %p442_p13 = scmp.lt.s32.totalorder %s3267_s10, 16 }
  0x38   : > { %s1250_s1 = scalar_lea.vmem %s3285_s18, %s2881_s0  ;;  %3049 = vmatpush3.msra.mxu1 %v3264_v0  ;;  %s4656_s9 = smov (!%p2886_p11, %s1360_s9), 15 }
  0x39   : > { %v1251_v17 = vld [vmem:[%s1250_s1] sm:$0xff]  ;;  %v1252_v18 = vld [vmem:[%s1250_s1 + $0x8] sm:$0xff]  ;;  %s2891_s13 = sshll.u32 %s4656_s9, 4  ;;  %3093 = vmatprep.subr.bf16.mxu1 %v3085_v25  ;;  %p327_p0 = scmp.ge.s32.totalorder %s3288_s19, 0 }
  0x3a   : > { %3045 = vmatprep.mubr.msk.f32.mxu0 %vm349_vm0, %v1251_v17  ;;  %s1364_s20 = scalar_lea.vmem %s3285_s18, %s2891_s13  ;;  %p328_p1 = scmp.lt.s32.totalorder %s3288_s19, 16 }
  0x3b   : > { %3046 = vmatmul.mubr.msk.f32.vlgmr.msra.gmra.mrb[8].mxu0 %vm349_vm0, %v1252_v18  ;;  %v1365_v19 = vld [vmem:[%s1364_s20] sm:$0xff]  ;;  %v1366_v20 = vld [vmem:[%s1364_s20 + $0x8] sm:$0xff]  ;;  %p3428_p2 = pnand %p442_p13, %p441_p12  ;;  %p669_p4 = scmp.ge.s32.totalorder %s3297_s23, 0 }
  0x3c   : > { %3050 = vmatprep.mubr.msk.f32.mxu1 %vm349_vm0, %v1365_v19  ;;  %3088 = vmatpush3.bf16.msra.mxu0 %v3085_v25  ;;  %p3432_p3 = pnand %p328_p1, %p327_p0  ;;  %p670_p5 = scmp.lt.s32.totalorder %s3297_s23, 16 }
  0x3d   : > { %3051 = vmatmul.mubr.msk.f32.vlgmr.msra.gmra.mrb[8].mxu1 %vm349_vm0, %v1366_v20  ;;  %3090 = vmatprep.subr.bf16.mxu0 %v3089_v27  ;;  %s2805_s1 = scalar_select %p3428_p2, 0, 1 }
  0x3e   : > { %3095 = vmatpush3.bf16.msra.mxu1 %v3085_v25  ;;  %s2795_s17 = scalar_select %p3432_p3, 0, 1 }
  0x3f   : > { %3094 = vmatprep.subr.bf16.mxu1 %v3089_v27  ;;  %p555_p6 = scmp.ge.s32.totalorder %s3308_s12, 0  ;;  %p556_p7 = scmp.lt.s32.totalorder %s3308_s12, 16 }
  0x40   : > { %3092 = vmatpush3.bf16.msra.mxu0 %v3089_v27  ;;  %p897_p8 = scmp.ge.s32.totalorder %s3316_s14, 0  ;;  %p898_p9 = scmp.lt.s32.totalorder %s3316_s14, 16 }
  0x41   : > { %p3446_p10 = pnand %p670_p5, %p669_p4  ;;  %p783_p11 = scmp.ge.s32.totalorder %s3329_s21, 0 }
  0x42   : > { %3096 = vmatpush3.bf16.msra.mxu1 %v3089_v27  ;;  %p784_p12 = scmp.lt.s32.totalorder %s3329_s21, 16  ;;  %p3452_p13 = pnand %p556_p7, %p555_p6 }
  0x43   : > { %p3456_p0 = pnand %p898_p9, %p897_p8  ;;  %s3462_s14 = scvt.s32.f32 %s2805_s1 }
  0x44   : > { %s2825_s12 = scalar_select %p3446_p10, 0, 1 }
  0x45   : > { %p3464_p1 = pnand %p784_p12, %p783_p11  ;;  %p1011_p2 = scmp.ge.s32.totalorder %s3339_s11, 0  ;;  %v548_v34 = vstv %s3462_s14 }
  0x46   : > { %s2815_s21 = scalar_select %p3452_p13, 0, 1 }
  0x47   : > { %s2845_s9 = scalar_select %p3456_p0, 0, 1 }
  0x48   : > { %p1012_p4 = scmp.lt.s32.totalorder %s3339_s11, 16  ;;  %p1125_p5 = scmp.ge.s32.totalorder %s3354_s22, 0 }
  0x49   : > { %s2835_s13 = scalar_select %p3464_p1, 0, 1 }
  0x4a   : > { %p1126_p6 = scmp.lt.s32.totalorder %s3354_s22, 16  ;;  %p1239_p7 = scmp.ge.s32.totalorder %s3362_s8, 0 }
  0x4b   : > { %p1240_p8 = scmp.lt.s32.totalorder %s3362_s8, 16  ;;  %p1353_p9 = scmp.ge.s32.totalorder %s3377_s16, 0 }
  0x4c   : > { %p3490_p11 = pnand %p1012_p4, %p1011_p2  ;;  %p3495_p12 = pnand %p1126_p6, %p1125_p5 }
  0x4d   : > { %s3502_s8 = scvt.s32.f32 %s2795_s17  ;;  %p3504_p10 = pnand %p1240_p8, %p1239_p7 }
  0x4e   : > { %s3509_s11 = scvt.s32.f32 %s2825_s12  ;;  %p4621_p2 = scmp.lt.s32.totalorder %s3377_s16, 16 }
  0x4f   : > { %s2855_s0 = scalar_select %p3490_p11, 0, 1  ;;  %v435_v44 = vstv %s3502_s8 }
  0x50   : > { %p3515_p4 = pnand %p4621_p2, %p1353_p9  ;;  %s3535_s14 = scvt.s32.f32 %s2815_s21  ;;  %v776_v56 = vstv %s3509_s11 }
  0x51   : > { %s2865_s17 = scalar_select %p3495_p12, 0, 1 }
  0x52   : > { %s2875_s16 = scalar_select %p3504_p10, 0, 1  ;;  %v662_v59 = vstv %s3535_s14 }
  0x53   : > { %s2885_s12 = scalar_select %p3515_p4, 0, 1 }
  0x54   : > { %s3542_s30 = scvt.s32.f32 %s2845_s9  ;;  %s3547_s1 = scvt.s32.f32 %s2835_s13 }
  0x55   : > { %s3549_s19 = scvt.s32.f32 %s2855_s0  ;;  %s3551_s21 = scvt.s32.f32 %s2865_s17 }
  0x56   : > { %s3554_s22 = scvt.s32.f32 %s2875_s16  ;;  %s3556_s23 = scvt.s32.f32 %s2885_s12  ;;  %v1004_v63 = vstv %s3542_s30  ;;  %v890_v0 = vstv %s3547_s1 }
  0x57   : > { %v1118_v6 = vstv %s3549_s19  ;;  %v1232_v7 = vstv %s3551_s21  ;;  %s2792_s17 = sshll.u32 %s3280_s15, 3 }
  0x58   : > { %v1346_v11 = vstv %s3554_s22  ;;  %v1460_v12 = vstv %s3556_s23  ;;  %s2952_s23 = sshll.u32 %s3170_s24, 7 }
  0x59   : > { %s4506_s11 = scalar_lea.vmem %s3285_s18, %s2952_s23  ;;  %s4520_s18 = scalar_lea.vmem %s4605_s7, %s2792_s17 }
  0xf0   : > { %v3012_v29 = vpop.f32.mrb[0].mxu1 }
  0xf1   : > { %v541_v30 = vadd.f32 %v3012_v29, %v3479_v28  ;;  %v535_v31 = vpop.f32.mrb[1].mxu1  ;;  %v3623_v29 = vld [vmem:[%s4601_s3] ss:$0 sm:$0xff] }
  0xf2   : > { %v536_v32 = vadd.f32 %v3479_v28, %v535_v31  ;;  %v3007_v35 = vpop.f32.mrb[0].mxu0 }
  0xf3   : > { %v545_v33 = vmax.f32 %v541_v30, 0.0  ;;  %v428_v38 = vadd.f32 %v3007_v35, %v3479_v28  ;;  %v422_v39 = vpop.f32.mrb[1].mxu0 }
  0xf4   : > { %v544_v36 = vmax.f32 %v536_v32, 0.0  ;;  %v423_v41 = vadd.f32 %v3479_v28, %v422_v39 }
  0xf5   : > { %v547_v37 = vmin.f32 %v545_v33, 6.0  ;;  %v432_v43 = vmax.f32 %v428_v38, 0.0  ;;  %v3022_v47 = vpop.f32.mrb[2].mxu1 }
  0xf6   : > { %v546_v40 = vmin.f32 %v544_v36, 6.0  ;;  %v431_v46 = vmax.f32 %v423_v41, 0.0  ;;  %v769_v49 = vadd.f32 %v3022_v47, %v3479_v28  ;;  %v763_v50 = vpop.f32.mrb[3].mxu1 }
  0xf7   : > { %v550_v42 = vmul.f32 %v548_v34, %v547_v37  ;;  %v434_v48 = vmin.f32 %v432_v43, 6.0  ;;  %v764_v52 = vadd.f32 %v3479_v28, %v763_v50 }
  0xf8   : > { %v549_v45 = vmul.f32 %v548_v34, %v546_v40  ;;  %v433_v51 = vmin.f32 %v431_v46, 6.0  ;;  %v773_v54 = vmax.f32 %v769_v49, 0.0  ;;  %v3635_v34 = vld [vmem:[%s4601_s3 + $0x2] ss:$0 sm:$0xff] }
  0xf9   : > { %553 = vst.msk [vmem:[#allocation2 + $0x21] sm:$0xff] %vm438_vm2, %v550_v42  ;;  %v437_v53 = vmul.f32 %v435_v44, %v434_v48  ;;  %v772_v57 = vmax.f32 %v764_v52, 0.0 }
  0xfa   : > { %552 = vst.msk [vmem:[#allocation2 + $0x19] sm:$0xff] %vm438_vm2, %v549_v45  ;;  %v436_v55 = vmul.f32 %v435_v44, %v433_v51  ;;  %v775_v58 = vmin.f32 %v773_v54, 6.0  ;;  %v3017_v61 = vpop.f32.mrb[2].mxu0 }
  0xfb   : > { %440 = vst.msk [vmem:[#allocation2 + $0x9] sm:$0xff] %vm438_vm2, %v437_v53  ;;  %v774_v62 = vmin.f32 %v772_v57, 6.0  ;;  %v655_v4 = vadd.f32 %v3017_v61, %v3479_v28  ;;  %v649_v5 = vpop.f32.mrb[3].mxu0 }
  0xfc   : > { %439 = vst.msk [vmem:[#allocation2 + $0x1] sm:$0xff] %vm438_vm2, %v436_v55  ;;  %v778_v3 = vmul.f32 %v776_v56, %v775_v58  ;;  %v650_v10 = vadd.f32 %v3479_v28, %v649_v5 }
  0xfd   : > { %v777_v9 = vmul.f32 %v776_v56, %v774_v62  ;;  %v659_v14 = vmax.f32 %v655_v4, 0.0 }
  0xfe   : > { %781 = vst.msk [vmem:[#allocation2 + $0x51] sm:$0xff] %vm438_vm2, %v778_v3  ;;  %v658_v20 = vmax.f32 %v650_v10, 0.0  ;;  %v3032_v21 = vpop.f32.mrb[4].mxu1 }
  0xff   : > { %780 = vst.msk [vmem:[#allocation2 + $0x49] sm:$0xff] %vm438_vm2, %v777_v9  ;;  %v661_v25 = vmin.f32 %v659_v14, 6.0  ;;  %v997_v26 = vadd.f32 %v3032_v21, %v3479_v28  ;;  %v991_v27 = vpop.f32.mrb[5].mxu1 }
 0x100   : > { %v3589_v13 = vld [vmem:[#allocation2 + $0x28] sm:$0x3]  ;;  %v660_v32 = vmin.f32 %v658_v20, 6.0  ;;  %v992_v33 = vadd.f32 %v3479_v28, %v991_v27 }
 0x101   : > { %v3592_v15 = vld [vmem:[#allocation2 + $0x18] sm:$0xff]  ;;  %v3594_v16 = vld [vmem:[#allocation2 + $0x20] sm:$0xff]  ;;  %v3598_v17 = vmul.f32 %v3571_v1, %v3589_v13  ;;  %v3602_v18 = vmul.f32 %v3576_v2, %v3589_v13  ;;  %v3606_v19 = vmul.f32 %v3563_v60, %v3589_v13  ;;  %v664_v37 = vmul.f32 %v662_v59, %v661_v25  ;;  %v3027_v44 = vpop.f32.mrb[4].mxu0 }
 0x102   : > { %v3611_v22 = vmul.f32 %v3584_v8, %v3592_v15  ;;  %v1828_v23 = vmul.f32 %v3571_v1, %v3592_v15  ;;  %v3617_v24 = vmul.f32 %v3571_v1, %v3594_v16  ;;  %v1953_v30 = vmul.f32 %v3576_v2, %v3592_v15  ;;  %v877_v50 = vpop.f32.mrb[5].mxu0  ;;  %v1468_v10 = vld [vmem:[#allocation2 + $0x10] sm:$0x3] }
 0x103   : > { %v3629_v31 = vmul.f32 %v3576_v2, %v3594_v16  ;;  %v1001_v38 = vmax.f32 %v997_v26, 0.0  ;;  %v1466_v39 = vld [vmem:[#allocation2] sm:$0xff]  ;;  %v1467_v40 = vld [vmem:[#allocation2 + $0x8] sm:$0xff]  ;;  %v663_v43 = vmul.f32 %v662_v59, %v660_v32  ;;  %v1000_v45 = vmax.f32 %v992_v33, 0.0  ;;  %667 = vst.msk [vmem:[#allocation2 + $0x39] sm:$0xff] %vm438_vm2, %v664_v37 }
 0x104   : > { %v1876_v35 = vrot.slane %v1828_v23, 1  ;;  %v1877_v36 = vrot.slane %v3617_v24, 1  ;;  %v2001_v41 = vrot.slane %v1953_v30, 2  ;;  %v1501_v46 = vmul.f32 %v3623_v29, %v1466_v39  ;;  %v3682_v37 = vld [vmem:[%s4601_s3 + $0x9] ss:$0 sm:$0xff] }
 0x105   : > { %v2002_v42 = vrot.slane %v3629_v31, 2  ;;  %v1538_v47 = vmul.f32 %v3563_v60, %v1466_v39  ;;  %v1003_v48 = vmin.f32 %v1001_v38, 6.0  ;;  %v883_v49 = vadd.f32 %v3027_v44, %v3479_v28  ;;  %666 = vst.msk [vmem:[#allocation2 + $0x31] sm:$0xff] %vm438_vm2, %v663_v43  ;;  %v3037_v4 = vpop.f32.mrb[6].mxu0 }
 0x106   : > { %v3644_v51 = vmul.f32 %v3563_v60, %v1467_v40  ;;  %v1664_v52 = vmul.f32 %v3635_v34, %v1466_v39  ;;  %v1002_v53 = vmin.f32 %v1000_v45, 6.0  ;;  %v878_v54 = vadd.f32 %v3479_v28, %v877_v50  ;;  %v1105_v21 = vpop.f32.mrb[7].mxu0  ;;  %v3691_v45 = vld [vmem:[%s4601_s3 + $0xa] ss:$0 sm:$0xff] }
 0x107   : > { %v1587_v55 = vrot.slane %v1538_v47, 1  ;;  %v3650_v56 = vmul.f32 %v3635_v34, %v1467_v40  ;;  %v1006_v57 = vmul.f32 %v1004_v63, %v1003_v48  ;;  %v887_v58 = vmax.f32 %v883_v49, 0.0 }
 0x108   : > { %v1588_v59 = vrot.slane %v3644_v51, 1  ;;  %v1713_v61 = vrot.slane %v1664_v52, 2  ;;  %v1005_v62 = vmul.f32 %v1004_v63, %v1002_v53  ;;  %v886_v3 = vmax.f32 %v878_v54, 0.0 }
 0x109   : > { %v1714_v5 = vrot.slane %v3650_v56, 2  ;;  %v1878_v9 = vsel %vm1586_vm3, %v1876_v35, %v1877_v36  ;;  %1009 = vst.msk [vmem:[#allocation2 + $0x81] sm:$0xff] %vm438_vm2, %v1006_v57  ;;  %v889_v14 = vmin.f32 %v887_v58, 6.0  ;;  %v1111_v20 = vadd.f32 %v3037_v4, %v3479_v28  ;;  %v3677_v35 = vld [vmem:[%s4601_s3 + $0x8] ss:$0 sm:$0xff] }
 0x10a   : > { %v1589_v23 = vsel %vm1586_vm3, %v1587_v55, %v1588_v59  ;;  %v2003_v63 = vsel %vm1712_vm4, %v2001_v41, %v2002_v42  ;;  %1008 = vst.msk [vmem:[#allocation2 + $0x79] sm:$0xff] %vm438_vm2, %v1005_v62  ;;  %v888_v25 = vmin.f32 %v886_v3, 6.0  ;;  %v1106_v26 = vadd.f32 %v3479_v28, %v1105_v21  ;;  %v3042_v52 = vpop.f32.mrb[6].mxu1  ;;  %v3747_v56 = vld [vmem:[%s4602_s4] ss:$0 sm:$0xff] }
 0x10b   : > { %v1643_v27 = vadd.f32 %v1589_v23, %v1501_v46  ;;  %v1715_v30 = vsel %vm1712_vm4, %v1713_v61, %v1714_v5  ;;  %v892_v32 = vmul.f32 %v890_v0, %v889_v14  ;;  %v1115_v33 = vmax.f32 %v1111_v20, 0.0  ;;  %v1219_v61 = vpop.f32.mrb[7].mxu1 }
 0x10c   : > { %v1502_v38 = vmul.f32 %v3623_v29, %v1467_v40  ;;  %v1540_v39 = vmul.f32 %v3563_v60, %v1468_v10  ;;  %v891_v41 = vmul.f32 %v890_v0, %v888_v25  ;;  %v1114_v43 = vmax.f32 %v1106_v26, 0.0  ;;  %v3695_v48 = vld [vmem:[#allocation2 + $0x30] sm:$0xff]  ;;  %v3697_v40 = vld [vmem:[#allocation2 + $0x38] sm:$0xff] }
 0x10d   : > { %v1769_v44 = vadd.f32 %v1715_v30, %v1643_v27  ;;  %v1666_v46 = vmul.f32 %v3635_v34, %v1468_v10  ;;  %895 = vst.msk [vmem:[#allocation2 + $0x69] sm:$0xff] %vm438_vm2, %v892_v32  ;;  %v1117_v47 = vmin.f32 %v1115_v33, 6.0  ;;  %v1792_v0 = vmul.f32 %v3584_v8, %v3594_v16 }
 0x10e   : > { %v1590_v49 = vrot.slane %v1540_v39, 1  ;;  %v1879_v50 = vrot.slane %v3598_v17, 1  ;;  %894 = vst.msk [vmem:[#allocation2 + $0x61] sm:$0xff] %vm438_vm2, %v891_v41  ;;  %v1116_v51 = vmin.f32 %v1114_v43, 6.0  ;;  %v2079_v54 = vmul.f32 %v3677_v35, %v3695_v48  ;;  %v3047_v26 = vpop.f32.mrb[8].mxu0 }
 0x10f   : > { %v1807_v53 = vadd.f32 %v3611_v22, %v1769_v44  ;;  %v2116_v55 = vmul.f32 %v3682_v37, %v3695_v48  ;;  %v1120_v57 = vmul.f32 %v1118_v6, %v1117_v47  ;;  %v1225_v58 = vadd.f32 %v3042_v52, %v3479_v28  ;;  %v1333_v33 = vpop.f32.mrb[9].mxu0 }
 0x110   : > { %v3713_v17 = vmul.f32 %v3682_v37, %v3697_v40  ;;  %v2241_v62 = vmul.f32 %v3691_v45, %v3695_v48  ;;  %v1119_v22 = vmul.f32 %v1118_v6, %v1116_v51  ;;  %v1220_v3 = vadd.f32 %v3479_v28, %v1219_v61 }
 0x111   : > { %v1932_v4 = vadd.f32 %v1878_v9, %v1807_v53  ;;  %v2164_v10 = vrot.slane %v2116_v55, 1  ;;  %1123 = vst.msk [vmem:[#allocation2 + $0x99] sm:$0xff] %vm438_vm2, %v1120_v57  ;;  %v1229_v14 = vmax.f32 %v1225_v58, 0.0  ;;  %v3724_v21 = vmul.f32 %v3691_v45, %v3697_v40  ;;  %v3052_v55 = vpop.f32.mrb[8].mxu1 }
 0x112   : > { %v2165_v20 = vrot.slane %v3713_v17, 1  ;;  %v2289_v23 = vrot.slane %v2241_v62, 2  ;;  %1122 = vst.msk [vmem:[#allocation2 + $0x91] sm:$0xff] %vm438_vm2, %v1119_v22  ;;  %v1228_v25 = vmax.f32 %v1220_v3, 0.0  ;;  %v1591_v9 = vsel %vm1586_vm3, %v1588_v59, %v1590_v49  ;;  %v1447_v61 = vpop.f32.mrb[9].mxu1 }
 0x113   : > { %v2057_v6 = vadd.f32 %v2003_v63, %v1932_v4  ;;  %v1716_v27 = vrot.slane %v1666_v46, 2  ;;  %v1231_v30 = vmin.f32 %v1229_v14, 6.0  ;;  %v1339_v32 = vadd.f32 %v3047_v26, %v3479_v28  ;;  %v3755_v4 = vld [vmem:[#allocation2 + $0x40] sm:$0x3] }
 0x114   : > { %v2166_v39 = vsel %vm1586_vm3, %v2164_v10, %v2165_v20  ;;  %v2290_v41 = vrot.slane %v3724_v21, 2  ;;  %v1230_v43 = vmin.f32 %v1228_v25, 6.0  ;;  %v1334_v44 = vadd.f32 %v3479_v28, %v1333_v33 }
 0x115   : > { %v2095_v47 = vadd.f32 %v2079_v54, %v2057_v6  ;;  %v1644_v51 = vadd.f32 %v1591_v9, %v1502_v38  ;;  %v1234_v63 = vmul.f32 %v1232_v7, %v1231_v30  ;;  %v1343_v52 = vmax.f32 %v1339_v32, 0.0 }
 0x116   : > { %v2291_v59 = vsel %vm1712_vm4, %v2289_v23, %v2290_v41  ;;  %v1717_v46 = vsel %vm1712_vm4, %v1714_v5, %v1716_v27  ;;  %v1233_v49 = vmul.f32 %v1232_v7, %v1230_v43  ;;  %v1342_v53 = vmax.f32 %v1334_v44, 0.0 }
 0x117   : > { %v2220_v57 = vadd.f32 %v2166_v39, %v2095_v47  ;;  %v1770_v58 = vadd.f32 %v1717_v46, %v1644_v51  ;;  %1237 = vst.msk [vmem:[#allocation2 + $0xb1] sm:$0xff] %vm438_vm2, %v1234_v63  ;;  %v1345_v54 = vmin.f32 %v1343_v52, 6.0  ;;  %v1453_v38 = vadd.f32 %v3052_v55, %v3479_v28 }
 0x118   : > { %v1880_v7 = vsel %vm1586_vm3, %v1877_v36, %v1879_v50  ;;  %v2004_v5 = vrot.slane %v3602_v18, 2  ;;  %1236 = vst.msk [vmem:[#allocation2 + $0xa9] sm:$0xff] %vm438_vm2, %v1233_v49  ;;  %v1344_v62 = vmin.f32 %v1342_v53, 6.0  ;;  %v1448_v22 = vadd.f32 %v3479_v28, %v1447_v61  ;;  %v3805_v61 = vld [vmem:[#allocation2 + $0x50] sm:$0xff] }
 0x119   : > { %v2345_v3 = vadd.f32 %v2291_v59, %v2220_v57  ;;  %v1808_v10 = vadd.f32 %v1792_v0, %v1770_v58  ;;  %v1348_v14 = vmul.f32 %v1346_v11, %v1345_v54  ;;  %v1457_v21 = vmax.f32 %v1453_v38, 0.0  ;;  %v3803_v57 = vld [vmem:[#allocation2 + $0x48] sm:$0xff] }
 0x11a   : > { %v2005_v24 = vsel %vm1712_vm4, %v2002_v42, %v2004_v5  ;;  %v2080_v18 = vmul.f32 %v3677_v35, %v3697_v40  ;;  %v1347_v36 = vmul.f32 %v1346_v11, %v1344_v62  ;;  %v1456_v50 = vmax.f32 %v1448_v22, 0.0 }
 0x11b   : > { %v2368_v28 = vadd.f32 %v3747_v56, %v2345_v3  ;;  %v1933_v23 = vadd.f32 %v1880_v7, %v1808_v10  ;;  %1351 = vst.msk [vmem:[#allocation2 + $0xc9] sm:$0xff] %vm438_vm2, %v1348_v14  ;;  %v1459_v0 = vmin.f32 %v1457_v21, 6.0  ;;  %v2118_v25 = vmul.f32 %v3682_v37, %v3755_v4 }
 0x11c   : > { %v2243_v31 = vmul.f32 %v3691_v45, %v3755_v4  ;;  %v1503_v42 = vmul.f32 %v3623_v29, %v3592_v15  ;;  %1350 = vst.msk [vmem:[#allocation2 + $0xc1] sm:$0xff] %vm438_vm2, %v1347_v36  ;;  %v1458_v11 = vmin.f32 %v1456_v50, 6.0  ;;  %v1541_v9 = vmul.f32 %v3563_v60, %v3592_v15 }
 0x11d   : > { %v2384_v26 = vmax.f32 %v2368_v28, 0.0  ;;  %v2058_v6 = vadd.f32 %v2005_v24, %v1933_v23  ;;  %v1462_v27 = vmul.f32 %v1460_v12, %v1459_v0  ;;  %v2167_v30 = vrot.slane %v2118_v25, 1 }
 0x11e   : > { %v2292_v32 = vrot.slane %v2243_v31, 2  ;;  %v1542_v33 = vmul.f32 %v3563_v60, %v3594_v16  ;;  %v1461_v39 = vmul.f32 %v1460_v12, %v1458_v11  ;;  %v1592_v47 = vrot.slane %v1541_v9, 1 }
 0x11f   : > { %v2400_v43 = vmin.f32 %v2384_v26, 6.0  ;;  %v2096_v44 = vadd.f32 %v2080_v18, %v2058_v6  ;;  %1465 = vst.msk [vmem:[#allocation2 + $0xe1] sm:$0xff] %vm438_vm2, %v1462_v27  ;;  %v2168_v51 = vsel %vm1586_vm3, %v2165_v20, %v2167_v30  ;;  %v1667_v59 = vmul.f32 %v3635_v34, %v3592_v15 }
 0x120   : > { %v2293_v63 = vsel %vm1712_vm4, %v2290_v41, %v2292_v32  ;;  %v1593_v52 = vrot.slane %v1542_v33, 1  ;;  %1464 = vst.msk [vmem:[#allocation2 + $0xd9] sm:$0xff] %vm438_vm2, %v1461_v39  ;;  %v1668_v46 = vmul.f32 %v3635_v34, %v3594_v16  ;;  %v1793_v49 = vmul.f32 %v3584_v8, %v3695_v48 }
 0x121   : > { %3061 = vmatprep.mubr.msk.f32.mxu0 %vm438_vm2, %v2400_v43  ;;  %v2221_v12 = vadd.f32 %v2168_v51, %v2096_v44  ;;  %v1831_v17 = vmul.f32 %v3571_v1, %v3695_v48  ;;  %v1718_v41 = vrot.slane %v1667_v59, 2  ;;  %v1832_v15 = vmul.f32 %v3571_v1, %v3697_v40 }
 0x122   : > { %v1594_v20 = vsel %vm1586_vm3, %v1592_v47, %v1593_v52  ;;  %v1956_v53 = vmul.f32 %v3576_v2, %v3695_v48  ;;  %v1719_v54 = vrot.slane %v1668_v46, 2  ;;  %v1957_v5 = vmul.f32 %v3576_v2, %v3697_v40 }
 0x123   : > { %v2346_v55 = vadd.f32 %v2293_v63, %v2221_v12  ;;  %v1645_v58 = vadd.f32 %v1594_v20, %v1503_v42  ;;  %v1881_v38 = vrot.slane %v1831_v17, 1  ;;  %v1882_v7 = vrot.slane %v1832_v15, 1 }
 0x124   : > { %v2006_v62 = vrot.slane %v1956_v53, 2  ;;  %v2081_v22 = vmul.f32 %v3677_v35, %v3803_v57  ;;  %v1720_v10 = vsel %vm1712_vm4, %v1718_v41, %v1719_v54  ;;  %v2119_v14 = vmul.f32 %v3682_v37, %v3803_v57 }
 0x125   : > { %v2369_v3 = vadd.f32 %v3747_v56, %v2346_v55  ;;  %v2120_v21 = vmul.f32 %v3682_v37, %v3805_v61  ;;  %v1771_v24 = vadd.f32 %v1720_v10, %v1645_v58  ;;  %v1883_v18 = vsel %vm1586_vm3, %v1881_v38, %v1882_v7 }
 0x126   : > { %v2007_v36 = vrot.slane %v1957_v5, 2  ;;  %v2244_v50 = vmul.f32 %v3691_v45, %v3803_v57  ;;  %v2169_v23 = vrot.slane %v2119_v14, 1  ;;  %v2245_v25 = vmul.f32 %v3691_v45, %v3805_v61 }
 0x127   : > { %v2385_v28 = vmax.f32 %v2369_v3, 0.0  ;;  %v2170_v0 = vrot.slane %v2120_v21, 1  ;;  %v1809_v31 = vadd.f32 %v1793_v49, %v1771_v24  ;;  %v1504_v26 = vmul.f32 %v3623_v29, %v3594_v16 }
 0x128   : > { %v2008_v42 = vsel %vm1712_vm4, %v2006_v62, %v2007_v36  ;;  %v2294_v11 = vrot.slane %v2244_v50, 2  ;;  %v2295_v27 = vrot.slane %v2245_v25, 2  ;;  %v1595_v30 = vrot.slane %v3606_v19, 1 }
 0x129   : > { %v2401_v6 = vmin.f32 %v2385_v28, 6.0  ;;  %v2171_v9 = vsel %vm1586_vm3, %v2169_v23, %v2170_v0  ;;  %v1934_v32 = vadd.f32 %v1883_v18, %v1809_v31  ;;  %v1669_v33 = vmul.f32 %v3635_v34, %v3589_v13  ;;  %v3840_v13 = vld [vmem:[#allocation2 + $0x58] sm:$0x3]  ;;  %v3876_v31 = vld [vmem:[#allocation2 + $0x60] sm:$0xff] }
 0x12a   : > { %v1794_v39 = vmul.f32 %v3584_v8, %v3697_v40  ;;  %v1833_v43 = vmul.f32 %v3571_v1, %v3755_v4  ;;  %v2296_v16 = vsel %vm1712_vm4, %v2294_v11, %v2295_v27  ;;  %v1596_v44 = vsel %vm1586_vm3, %v1593_v52, %v1595_v30 }
 0x12b   : > { %3062 = vmatmul.mubr.msk.f32.vlgmr.msra.gmra.mrb[10].mxu0 %vm438_vm2, %v2401_v6  ;;  %v1958_v47 = vmul.f32 %v3576_v2, %v3755_v4  ;;  %v2082_v19 = vmul.f32 %v3677_v35, %v3805_v61  ;;  %v2059_v51 = vadd.f32 %v2008_v42, %v1934_v32  ;;  %v1646_v63 = vadd.f32 %v1596_v44, %v1504_v26 }
 0x12c   : > { %v1721_v59 = vrot.slane %v1669_v33, 2  ;;  %v1884_v12 = vrot.slane %v1833_v43, 1  ;;  %v2121_v49 = vmul.f32 %v3682_v37, %v3840_v13  ;;  %v2246_v17 = vmul.f32 %v3691_v45, %v3840_v13 }
 0x12d   : > { %v2009_v46 = vrot.slane %v1958_v47, 2  ;;  %v1505_v52 = vmul.f32 %v3623_v29, %v3695_v48  ;;  %v2097_v20 = vadd.f32 %v2081_v22, %v2059_v51  ;;  %v1544_v53 = vmul.f32 %v3563_v60, %v3695_v48 }
 0x12e   : > { %v1722_v41 = vsel %vm1712_vm4, %v1719_v54, %v1721_v59  ;;  %v1885_v15 = vsel %vm1586_vm3, %v1882_v7, %v1884_v12  ;;  %v2172_v38 = vrot.slane %v2121_v49, 1  ;;  %v2297_v5 = vrot.slane %v2246_v17, 2 }
 0x12f   : > { %v1772_v55 = vadd.f32 %v1722_v41, %v1646_v63  ;;  %v2010_v58 = vsel %vm1712_vm4, %v2007_v36, %v2009_v46  ;;  %v2222_v62 = vadd.f32 %v2171_v9, %v2097_v20  ;;  %v3855_v3 = vmul.f32 %v3563_v60, %v3697_v40  ;;  %v3887_v9 = vld [vmem:[#allocation2 + $0x68] sm:$0xff] }
 0x130   : > { %v1597_v10 = vrot.slane %v1544_v53, 1  ;;  %v1670_v22 = vmul.f32 %v3635_v34, %v3695_v48  ;;  %v2173_v7 = vsel %vm1586_vm3, %v2170_v0, %v2172_v38  ;;  %v2298_v14 = vsel %vm1712_vm4, %v2295_v27, %v2297_v5 }
 0x131   : > { %v1810_v54 = vadd.f32 %v1794_v39, %v1772_v55  ;;  %v3863_v21 = vmul.f32 %v3635_v34, %v3697_v40  ;;  %v2347_v24 = vadd.f32 %v2296_v16, %v2222_v62  ;;  %v1598_v18 = vrot.slane %v3855_v3, 1 }
 0x132   : > { %v1723_v36 = vrot.slane %v1670_v22, 2  ;;  %v1795_v50 = vmul.f32 %v3584_v8, %v3803_v57  ;;  %v1834_v48 = vmul.f32 %v3571_v1, %v3803_v57  ;;  %v3873_v0 = vmul.f32 %v3571_v1, %v3805_v61 }
 0x133   : > { %v1935_v28 = vadd.f32 %v1885_v15, %v1810_v54  ;;  %v1724_v23 = vrot.slane %v3863_v21, 2  ;;  %v2370_v25 = vadd.f32 %v3747_v56, %v2347_v24  ;;  %v1599_v42 = vsel %vm1586_vm3, %v1597_v10, %v1598_v18  ;;  %v3930_v24 = vld [vmem:[#allocation2 + $0x78] sm:$0xff] }
 0x134   : > { %v1959_v11 = vmul.f32 %v3576_v2, %v3803_v57  ;;  %v3885_v26 = vmul.f32 %v3576_v2, %v3805_v61  ;;  %v1647_v27 = vadd.f32 %v1599_v42, %v1505_v52  ;;  %v1886_v32 = vrot.slane %v1834_v48, 1 }
 0x135   : > { %v2060_v6 = vadd.f32 %v2010_v58, %v1935_v28  ;;  %v1725_v30 = vsel %vm1712_vm4, %v1723_v36, %v1724_v23  ;;  %v2386_v33 = vmax.f32 %v2370_v25, 0.0  ;;  %v1887_v39 = vrot.slane %v3873_v0, 1 }
 0x136   : > { %v2011_v43 = vrot.slane %v1959_v11, 2  ;;  %v2012_v16 = vrot.slane %v3885_v26, 2  ;;  %v1773_v47 = vadd.f32 %v1725_v30, %v1647_v27  ;;  %v2083_v51 = vmul.f32 %v3677_v35, %v3876_v31 }
 0x137   : > { %v2098_v44 = vadd.f32 %v2082_v19, %v2060_v6  ;;  %v2122_v63 = vmul.f32 %v3682_v37, %v3876_v31  ;;  %v2402_v59 = vmin.f32 %v2386_v33, 6.0  ;;  %v1888_v12 = vsel %vm1586_vm3, %v1886_v32, %v1887_v39  ;;  %v3945_v6 = vld [vmem:[#allocation2 + $0x80] sm:$0xff] }
 0x138   : > { %v2013_v46 = vsel %vm1712_vm4, %v2011_v43, %v2012_v16  ;;  %v3906_v49 = vmul.f32 %v3682_v37, %v3887_v9  ;;  %v1811_v17 = vadd.f32 %v1795_v50, %v1773_v47  ;;  %v2247_v20 = vmul.f32 %v3691_v45, %v3876_v31 }
 0x139   : > { %v2223_v19 = vadd.f32 %v2173_v7, %v2098_v44  ;;  %v2174_v52 = vrot.slane %v2122_v63, 1  ;;  %3064 = vmatprep.mubr.msk.f32.mxu0 %vm438_vm2, %v2402_v59  ;;  %v3914_v15 = vmul.f32 %v3691_v45, %v3887_v9  ;;  %v1509_v53 = vmul.f32 %v3623_v29, %v3876_v31 }
 0x13a   : > { %v2175_v41 = vrot.slane %v3906_v49, 1  ;;  %v1550_v55 = vmul.f32 %v3563_v60, %v3876_v31  ;;  %v1936_v38 = vadd.f32 %v1888_v12, %v1811_v17  ;;  %v2299_v5 = vrot.slane %v2247_v20, 2  ;;  %v3966_v17 = vld [vmem:[#allocation2 + $0x98] sm:$0xff] }
 0x13b   : > { %v2348_v58 = vadd.f32 %v2298_v14, %v2223_v19  ;;  %v3922_v62 = vmul.f32 %v3563_v60, %v3887_v9  ;;  %v2300_v22 = vrot.slane %v3914_v15, 2  ;;  %v1676_v7 = vmul.f32 %v3635_v34, %v3876_v31 }
 0x13c   : > { %v2176_v10 = vsel %vm1586_vm3, %v2174_v52, %v2175_v41  ;;  %v1607_v54 = vrot.slane %v1550_v55, 1  ;;  %v2061_v36 = vadd.f32 %v2013_v46, %v1936_v38  ;;  %v3936_v28 = vmul.f32 %v3635_v34, %v3887_v9  ;;  %v3957_v46 = vld [vmem:[#allocation2 + $0x90] sm:$0xff] }
 0x13d   : > { %v2371_v14 = vadd.f32 %v3747_v56, %v2348_v58  ;;  %v1608_v50 = vrot.slane %v3922_v62, 1  ;;  %v2301_v48 = vsel %vm1712_vm4, %v2299_v5, %v2300_v22  ;;  %v1733_v25 = vrot.slane %v1676_v7, 2 }
 0x13e   : > { %v1799_v42 = vmul.f32 %v3584_v8, %v3930_v24  ;;  %v1840_v11 = vmul.f32 %v3571_v1, %v3930_v24  ;;  %v2099_v30 = vadd.f32 %v2083_v51, %v2061_v36  ;;  %v1734_v33 = vrot.slane %v3936_v28, 2 }
 0x13f   : > { %v2387_v27 = vmax.f32 %v2371_v14, 0.0  ;;  %v1609_v32 = vsel %vm1586_vm3, %v1607_v54, %v1608_v50  ;;  %v3953_v44 = vmul.f32 %v3571_v1, %v3945_v6  ;;  %v1965_v63 = vmul.f32 %v3576_v2, %v3930_v24 }
 0x140   : > { %v1651_v43 = vadd.f32 %v1609_v32, %v1509_v53  ;;  %v1896_v47 = vrot.slane %v1840_v11, 1  ;;  %v2224_v12 = vadd.f32 %v2176_v10, %v2099_v30  ;;  %v1735_v51 = vsel %vm1712_vm4, %v1733_v25, %v1734_v33 }
 0x141   : > { %v2403_v59 = vmin.f32 %v2387_v27, 6.0  ;;  %v3964_v19 = vmul.f32 %v3576_v2, %v3945_v6  ;;  %v1897_v20 = vrot.slane %v3953_v44, 1  ;;  %v2021_v53 = vrot.slane %v1965_v63, 2 }
 0x142   : > { %v1777_v52 = vadd.f32 %v1735_v51, %v1651_v43  ;;  %v2087_v55 = vmul.f32 %v3677_v35, %v3957_v46  ;;  %v2349_v58 = vadd.f32 %v2301_v48, %v2224_v12  ;;  %v2128_v5 = vmul.f32 %v3682_v37, %v3957_v46  ;;  %v3988_v48 = vld [vmem:[#allocation2 + $0x70] sm:$0x3] }
 0x143   : > { %3065 = vmatmul.mubr.msk.f32.gmra.mrb[12].mxu0 %vm438_vm2, %v2403_v59  ;;  %v2022_v38 = vrot.slane %v3964_v19, 2  ;;  %v3977_v10 = vmul.f32 %v3682_v37, %v3966_v17  ;;  %v1898_v7 = vsel %vm1586_vm3, %v1896_v47, %v1897_v20  ;;  %v2253_v14 = vmul.f32 %v3691_v45, %v3957_v46 }
 0x144   : > { %v1815_v54 = vadd.f32 %v1799_v42, %v1777_v52  ;;  %v3986_v36 = vmul.f32 %v3691_v45, %v3966_v17  ;;  %v2372_v25 = vadd.f32 %v3747_v56, %v2349_v58  ;;  %v2184_v42 = vrot.slane %v2128_v5, 1 }
 0x145   : > { %v2023_v11 = vsel %vm1712_vm4, %v2021_v53, %v2022_v38  ;;  %v2185_v27 = vrot.slane %v3977_v10, 1  ;;  %v2309_v32 = vrot.slane %v2253_v14, 2  ;;  %v1506_v47 = vmul.f32 %v3623_v29, %v3697_v40 }
 0x146   : > { %v1940_v30 = vadd.f32 %v1898_v7, %v1815_v54  ;;  %v4606_v43 = vrot.slane %v3986_v36, 2  ;;  %v2388_v63 = vmax.f32 %v2372_v25, 0.0  ;;  %v1546_v12 = vmul.f32 %v3563_v60, %v3755_v4 }
 0x147   : > { %v2186_v59 = vsel %vm1586_vm3, %v2184_v42, %v2185_v27  ;;  %v1552_v51 = vmul.f32 %v3563_v60, %v3988_v48  ;;  %v1672_v58 = vmul.f32 %v3635_v34, %v3755_v4  ;;  %v1796_v40 = vmul.f32 %v3584_v8, %v3805_v61 }
 0x148   : > { %v2065_v52 = vadd.f32 %v2023_v11, %v1940_v30  ;;  %v2311_v53 = vsel %vm1712_vm4, %v2309_v32, %v4606_v43  ;;  %v2404_v5 = vmin.f32 %v2388_v63, 6.0  ;;  %v1600_v54 = vrot.slane %v1546_v12, 1 }
 0x149   : > { %v1836_v7 = vmul.f32 %v3571_v1, %v3840_v13  ;;  %v1961_v14 = vmul.f32 %v3576_v2, %v3840_v13  ;;  %v1726_v11 = vrot.slane %v1672_v58, 2  ;;  %v2084_v42 = vmul.f32 %v3677_v35, %v3887_v9 }
 0x14a   : > { %v2103_v25 = vadd.f32 %v2087_v55, %v2065_v52  ;;  %v2124_v30 = vmul.f32 %v3682_v37, %v3988_v48  ;;  %3067 = vmatprep.mubr.msk.f32.mxu0 %vm438_vm2, %v2404_v5  ;;  %v1601_v4 = vsel %vm1586_vm3, %v1598_v18, %v1600_v54  ;;  %v2249_v12 = vmul.f32 %v3691_v45, %v3988_v48 }
 0x14b   : > { %v1889_v32 = vrot.slane %v1836_v7, 1  ;;  %v2014_v63 = vrot.slane %v1961_v14, 2  ;;  %v1648_v55 = vadd.f32 %v1601_v4, %v1506_v47  ;;  %v1727_v52 = vsel %vm1712_vm4, %v1724_v23, %v1726_v11  ;;  %v4040_v23 = vld [vmem:[#allocation2 + $0x88] sm:$0x3] }
 0x14c   : > { %v2228_v43 = vadd.f32 %v2186_v59, %v2103_v25  ;;  %v2177_v58 = vrot.slane %v2124_v30, 1  ;;  %v2302_v18 = vrot.slane %v2249_v12, 2  ;;  %v1510_v54 = vmul.f32 %v3623_v29, %v3887_v9 }
 0x14d   : > { %v1890_v5 = vsel %vm1586_vm3, %v1887_v39, %v1889_v32  ;;  %v2015_v3 = vsel %vm1712_vm4, %v2012_v16, %v2014_v63  ;;  %v1774_v59 = vadd.f32 %v1727_v52, %v1648_v55  ;;  %v1610_v47 = vrot.slane %v1552_v51, 1 }
 0x14e   : > { %v2353_v7 = vadd.f32 %v2311_v53, %v2228_v43  ;;  %v2178_v21 = vsel %vm1586_vm3, %v2175_v41, %v2177_v58  ;;  %v2303_v0 = vsel %vm1712_vm4, %v2300_v22, %v2302_v18  ;;  %v1678_v26 = vmul.f32 %v3635_v34, %v3988_v48  ;;  %v4057_v22 = vld [vmem:[#allocation2 + $0xa0] sm:$0x3] }
 0x14f   : > { %v1800_v39 = vmul.f32 %v3584_v8, %v3945_v6  ;;  %v1842_v16 = vmul.f32 %v3571_v1, %v4040_v23  ;;  %v1812_v43 = vadd.f32 %v1796_v40, %v1774_v59  ;;  %v1611_v41 = vsel %vm1586_vm3, %v1608_v50, %v1610_v47 }
 0x150   : > { %v2376_v49 = vadd.f32 %v3747_v56, %v2353_v7  ;;  %v1967_v15 = vmul.f32 %v3576_v2, %v4040_v23  ;;  %v1652_v51 = vadd.f32 %v1611_v41, %v1510_v54  ;;  %v1736_v53 = vrot.slane %v1678_v26, 2 }
 0x151   : > { %v1899_v14 = vrot.slane %v1842_v16, 1  ;;  %v2088_v25 = vmul.f32 %v3677_v35, %v3966_v17  ;;  %v1937_v30 = vadd.f32 %v1890_v5, %v1812_v43  ;;  %v2130_v40 = vmul.f32 %v3682_v37, %v4057_v22 }
 0x152   : > { %v2392_v11 = vmax.f32 %v2376_v49, 0.0  ;;  %v2024_v4 = vrot.slane %v1967_v15, 2  ;;  %v1737_v62 = vsel %vm1712_vm4, %v1734_v33, %v1736_v53  ;;  %v2255_v32 = vmul.f32 %v3691_v45, %v4057_v22 }
 0x153   : > { %v1900_v50 = vsel %vm1586_vm3, %v1897_v20, %v1899_v14  ;;  %v1507_v63 = vmul.f32 %v3623_v29, %v3803_v57  ;;  %v2062_v55 = vadd.f32 %v2015_v3, %v1937_v30  ;;  %v1778_v52 = vadd.f32 %v1737_v62, %v1652_v51 }
 0x154   : > { %v2408_v12 = vmin.f32 %v2392_v11, 6.0  ;;  %v2025_v58 = vsel %vm1712_vm4, %v2022_v38, %v2024_v4  ;;  %v2187_v28 = vrot.slane %v2130_v40, 1  ;;  %v2312_v5 = vrot.slane %v2255_v32, 2 }
 0x155   : > { %v1547_v33 = vmul.f32 %v3563_v60, %v3803_v57  ;;  %v4080_v44 = vmul.f32 %v3563_v60, %v3805_v61  ;;  %v2100_v20 = vadd.f32 %v2084_v42, %v2062_v55  ;;  %v1816_v18 = vadd.f32 %v1800_v39, %v1778_v52 }
 0x156   : > { %3073 = vmatprep.mubr.msk.f32.mxu1 %vm438_vm2, %v2408_v12  ;;  %v1673_v3 = vmul.f32 %v3635_v34, %v3803_v57  ;;  %v4087_v19 = vmul.f32 %v3635_v34, %v3805_v61  ;;  %v2188_v38 = vsel %vm1586_vm3, %v2185_v27, %v2187_v28  ;;  %v4623_v54 = vrot.slane %v3986_v36, 2 }
 0x157   : > { %v1602_v59 = vrot.slane %v1547_v33, 1  ;;  %v1603_v47 = vrot.slane %v4080_v44, 1  ;;  %v2225_v42 = vadd.f32 %v2178_v21, %v2100_v20  ;;  %v1941_v26 = vadd.f32 %v1900_v50, %v1816_v18 }
 0x158   : > { %v2313_v7 = vsel %vm1712_vm4, %v4623_v54, %v2312_v5  ;;  %v1728_v39 = vrot.slane %v1673_v3, 2  ;;  %v1729_v57 = vrot.slane %v4087_v19, 2  ;;  %v1797_v10 = vmul.f32 %v3584_v8, %v3876_v31 }
 0x159   : > { %v1604_v16 = vsel %vm1586_vm3, %v1602_v59, %v1603_v47  ;;  %v1837_v36 = vmul.f32 %v3571_v1, %v3876_v31  ;;  %v4106_v27 = vmul.f32 %v3571_v1, %v3887_v9  ;;  %v2350_v49 = vadd.f32 %v2303_v0, %v2225_v42 }
 0x15a   : > { %v2066_v21 = vadd.f32 %v2025_v58, %v1941_v26  ;;  %v1649_v43 = vadd.f32 %v1604_v16, %v1507_v63  ;;  %v1730_v41 = vsel %vm1712_vm4, %v1728_v39, %v1729_v57  ;;  %v1962_v53 = vmul.f32 %v3576_v2, %v3876_v31 }
 0x15b   : > { %v1891_v15 = vrot.slane %v1837_v36, 1  ;;  %v1892_v51 = vrot.slane %v4106_v27, 1  ;;  %v4116_v14 = vmul.f32 %v3576_v2, %v3887_v9  ;;  %v2373_v11 = vadd.f32 %v3747_v56, %v2350_v49 }
 0x15c   : > { %v2104_v30 = vadd.f32 %v2088_v25, %v2066_v21  ;;  %v1775_v0 = vadd.f32 %v1730_v41, %v1649_v43  ;;  %v2085_v4 = vmul.f32 %v3677_v35, %v3930_v24  ;;  %v2016_v62 = vrot.slane %v1962_v53, 2 }
 0x15d   : > { %v1893_v40 = vsel %vm1586_vm3, %v1891_v15, %v1892_v51  ;;  %v2017_v50 = vrot.slane %v4116_v14, 2  ;;  %v2125_v31 = vmul.f32 %v3682_v37, %v3930_v24  ;;  %v2389_v32 = vmax.f32 %v2373_v11, 0.0 }
 0x15e   : > { %v2229_v63 = vadd.f32 %v2188_v38, %v2104_v30  ;;  %v1813_v12 = vadd.f32 %v1797_v10, %v1775_v0  ;;  %v4129_v25 = vmul.f32 %v3682_v37, %v3945_v6  ;;  %v2250_v58 = vmul.f32 %v3691_v45, %v3930_v24 }
 0x15f   : > { %v2018_v55 = vsel %vm1712_vm4, %v2016_v62, %v2017_v50  ;;  %v2179_v52 = vrot.slane %v2125_v31, 1  ;;  %v4138_v28 = vmul.f32 %v3691_v45, %v3945_v6  ;;  %v2405_v5 = vmin.f32 %v2389_v32, 6.0 }
 0x160   : > { %v2354_v33 = vadd.f32 %v2313_v7, %v2229_v63  ;;  %v1938_v20 = vadd.f32 %v1893_v40, %v1813_v12  ;;  %v2180_v18 = vrot.slane %v4129_v25, 1  ;;  %v2304_v3 = vrot.slane %v2250_v58, 2  ;;  %v4184_v63 = vld [vmem:[#allocation2 + $0xa8] sm:$0xff]  ;;  %v4186_v12 = vld [vmem:[#allocation2 + $0xb0] sm:$0xff] }
 0x161   : > { %v2305_v38 = vrot.slane %v4138_v28, 2  ;;  %v1511_v54 = vmul.f32 %v3623_v29, %v3930_v24  ;;  %v1553_v59 = vmul.f32 %v3563_v60, %v3930_v24  ;;  %3068 = vmatmul.mubr.msk.f32.gmra.mrb[14].mxu0 %vm438_vm2, %v2405_v5  ;;  %v4153_v39 = vmul.f32 %v3563_v60, %v3945_v6 }
 0x162   : > { %v2377_v42 = vadd.f32 %v3747_v56, %v2354_v33  ;;  %v2063_v26 = vadd.f32 %v2018_v55, %v1938_v20  ;;  %v2181_v7 = vsel %vm1586_vm3, %v2179_v52, %v2180_v18  ;;  %v1679_v36 = vmul.f32 %v3635_v34, %v3930_v24 }
 0x163   : > { %v2306_v16 = vsel %vm1712_vm4, %v2304_v3, %v2305_v38  ;;  %v1612_v10 = vrot.slane %v1553_v59, 1  ;;  %v4162_v49 = vmul.f32 %v3635_v34, %v3945_v6  ;;  %v1613_v41 = vrot.slane %v4153_v39, 1 }
 0x164   : > { %v2393_v21 = vmax.f32 %v2377_v42, 0.0  ;;  %v2101_v43 = vadd.f32 %v2085_v4, %v2063_v26  ;;  %v1801_v60 = vmul.f32 %v3584_v8, %v3957_v46  ;;  %v1738_v15 = vrot.slane %v1679_v36, 2 }
 0x165   : > { %v1739_v53 = vrot.slane %v4162_v49, 2  ;;  %v1843_v11 = vmul.f32 %v3571_v1, %v3957_v46  ;;  %v4172_v24 = vmul.f32 %v3571_v1, %v3966_v17  ;;  %v1614_v4 = vsel %vm1586_vm3, %v1612_v10, %v1613_v41 }
 0x166   : > { %v2409_v30 = vmin.f32 %v2393_v21, 6.0  ;;  %v2226_v0 = vadd.f32 %v2181_v7, %v2101_v43  ;;  %v1968_v40 = vmul.f32 %v3576_v2, %v3957_v46  ;;  %v1653_v8 = vadd.f32 %v1614_v4, %v1511_v54 }
 0x167   : > { %v1740_v62 = vsel %vm1712_vm4, %v1738_v15, %v1739_v53  ;;  %v1901_v31 = vrot.slane %v1843_v11, 1  ;;  %v1902_v32 = vrot.slane %v4172_v24, 1  ;;  %v4190_v55 = vmul.f32 %v3576_v2, %v3966_v17 }
 0x168   : > { %3074 = vmatmul.mubr.msk.f32.vlgmr.msra.gmra.mrb[10].mxu1 %vm438_vm2, %v2409_v30  ;;  %v2351_v1 = vadd.f32 %v2306_v16, %v2226_v0  ;;  %v2026_v52 = vrot.slane %v1968_v40, 2  ;;  %v1779_v58 = vadd.f32 %v1740_v62, %v1653_v8  ;;  %v2131_v33 = vmul.f32 %v3682_v37, %v4184_v63 }
 0x169   : > { %v1903_v5 = vsel %vm1586_vm3, %v1901_v31, %v1902_v32  ;;  %v4199_v20 = vmul.f32 %v3682_v37, %v4186_v12  ;;  %v2027_v54 = vrot.slane %v4190_v55, 2  ;;  %v2256_v2 = vmul.f32 %v3691_v45, %v4184_v63 }
 0x16a   : > { %v2374_v3 = vadd.f32 %v3747_v56, %v2351_v1  ;;  %v4207_v59 = vmul.f32 %v3691_v45, %v4186_v12  ;;  %v1817_v42 = vadd.f32 %v1801_v60, %v1779_v58  ;;  %v2089_v26 = vmul.f32 %v3677_v35, %v4184_v63  ;;  %v4221_v60 = vld [vmem:[%s4601_s3 + $0x1] ss:$0 sm:$0xff]  ;;  %v4243_v1 = vld [vmem:[%s4601_s3 + $0x6] ss:$0 sm:$0xff]  ;;  %v4251_v58 = vld [vmem:[%s4601_s3 + $0x4] ss:$0 sm:$0xff] }
 0x16b   : > { %v2189_v7 = vrot.slane %v2131_v33, 1  ;;  %v2190_v16 = vrot.slane %v4199_v20, 1  ;;  %v2028_v36 = vsel %vm1712_vm4, %v2026_v52, %v2027_v54  ;;  %v2314_v21 = vrot.slane %v2256_v2, 2 }
 0x16c   : > { %v2390_v10 = vmax.f32 %v2374_v3, 0.0  ;;  %v2315_v43 = vrot.slane %v4207_v59, 2  ;;  %v1942_v15 = vadd.f32 %v1903_v5, %v1817_v42  ;;  %v1508_v11 = vmul.f32 %v3623_v29, %v3805_v61  ;;  %v4236_v61 = vld [vmem:[%s4601_s3 + $0x5] ss:$0 sm:$0xff]  ;;  %v4379_v59 = vld [vmem:[%s4601_s3 + $0x8] ss:$0 sm:$0xff] }
 0x16d   : > { %v1549_v30 = vmul.f32 %v4221_v60, %v3840_v13  ;;  %v1675_v0 = vmul.f32 %v3635_v34, %v3840_v13  ;;  %v2191_v40 = vsel %vm1586_vm3, %v2189_v7, %v2190_v16  ;;  %v1839_v8 = vmul.f32 %v4236_v61, %v3988_v48 }
 0x16e   : > { %v2406_v4 = vmin.f32 %v2390_v10, 6.0  ;;  %v2316_v29 = vsel %vm1712_vm4, %v2314_v21, %v2315_v43  ;;  %v2067_v62 = vadd.f32 %v2028_v36, %v1942_v15  ;;  %v1964_v52 = vmul.f32 %v4243_v1, %v3988_v48 }
 0x16f   : > { %v1605_v31 = vrot.slane %v1549_v30, 1  ;;  %v1731_v13 = vrot.slane %v1675_v0, 2  ;;  %v1798_v5 = vmul.f32 %v4251_v58, %v3887_v9  ;;  %v1894_v33 = vrot.slane %v1839_v8, 1 }
 0x170   : > { %3070 = vmatprep.mubr.msk.f32.mxu0 %vm438_vm2, %v2406_v4  ;;  %v2127_v3 = vmul.f32 %v3682_v37, %v4040_v23  ;;  %v2252_v2 = vmul.f32 %v3691_v45, %v4040_v23  ;;  %v2105_v42 = vadd.f32 %v2089_v26, %v2067_v62  ;;  %v2019_v10 = vrot.slane %v1964_v52, 2  ;;  %v4292_v4 = vld [vmem:[#allocation2 + $0xb8] sm:$0x3] }
 0x171   : > { %v1606_v48 = vsel %vm1586_vm3, %v1603_v47, %v1605_v31  ;;  %v1732_v7 = vsel %vm1712_vm4, %v1729_v57, %v1731_v13  ;;  %v2086_v9 = vmul.f32 %v3677_v35, %v3945_v6  ;;  %v1895_v26 = vsel %vm1586_vm3, %v1892_v51, %v1894_v33 }
 0x172   : > { %v1650_v36 = vadd.f32 %v1606_v48, %v1508_v11  ;;  %v2182_v21 = vrot.slane %v2127_v3, 1  ;;  %v2307_v15 = vrot.slane %v2252_v2, 2  ;;  %v2230_v30 = vadd.f32 %v2191_v40, %v2105_v42  ;;  %v4281_v11 = vld [vmem:[%s4601_s3] ss:$0 sm:$0xff] }
 0x173   : > { %v2020_v44 = vsel %vm1712_vm4, %v2017_v50, %v2019_v10  ;;  %v1555_v19 = vmul.f32 %v4221_v60, %v4040_v23  ;;  %v1512_v27 = vmul.f32 %v4281_v11, %v3945_v6  ;;  %v1681_v51 = vmul.f32 %v3635_v34, %v4040_v23 }
 0x174   : > { %v1776_v47 = vadd.f32 %v1732_v7, %v1650_v36  ;;  %v2183_v57 = vsel %vm1586_vm3, %v2180_v18, %v2182_v21  ;;  %v2355_v14 = vadd.f32 %v2316_v29, %v2230_v30  ;;  %v2308_v50 = vsel %vm1712_vm4, %v2305_v38, %v2307_v15 }
 0x175   : > { %v1615_v0 = vrot.slane %v1555_v19, 1  ;;  %v1845_v25 = vmul.f32 %v4236_v61, %v4057_v22  ;;  %v1741_v40 = vrot.slane %v1681_v51, 2  ;;  %v1802_v8 = vmul.f32 %v4251_v58, %v3966_v17 }
 0x176   : > { %v1814_v18 = vadd.f32 %v1798_v5, %v1776_v47  ;;  %v1970_v6 = vmul.f32 %v4243_v1, %v4057_v22  ;;  %v2378_v34 = vadd.f32 %v3747_v56, %v2355_v14  ;;  %v2133_v38 = vmul.f32 %v3682_v37, %v4292_v4 }
 0x177   : > { %v1616_v23 = vsel %vm1586_vm3, %v1613_v41, %v1615_v0  ;;  %v1904_v28 = vrot.slane %v1845_v25, 1  ;;  %v1742_v31 = vsel %vm1712_vm4, %v1739_v53, %v1741_v40  ;;  %v2090_v5 = vmul.f32 %v3677_v35, %v4186_v12  ;;  %v4360_v40 = vld [vmem:[#allocation2 + $0xc0] sm:$0xff] }
 0x178   : > { %v1939_v29 = vadd.f32 %v1895_v26, %v1814_v18  ;;  %v1654_v62 = vadd.f32 %v1616_v23, %v1512_v27  ;;  %v2029_v13 = vrot.slane %v1970_v6, 2  ;;  %v2394_v52 = vmax.f32 %v2378_v34, 0.0  ;;  %v4366_v34 = vld [vmem:[#allocation2 + $0xc8] sm:$0xff] }
 0x179   : > { %v2192_v33 = vrot.slane %v2133_v38, 1  ;;  %v2258_v39 = vmul.f32 %v3691_v45, %v4292_v4  ;;  %v1905_v37 = vsel %vm1586_vm3, %v1902_v32, %v1904_v28  ;;  %v1513_v35 = vmul.f32 %v4281_v11, %v3957_v46  ;;  %v4331_v32 = vld [vmem:[%s4601_s3 + $0x2] ss:$0 sm:$0xff]  ;;  %v4372_v38 = vld [vmem:[%s4601_s3 + $0x9] ss:$0 sm:$0xff] }
 0x17a   : > { %v2064_v41 = vadd.f32 %v2020_v44, %v1939_v29  ;;  %v1780_v3 = vadd.f32 %v1742_v31, %v1654_v62  ;;  %v2030_v49 = vsel %vm1712_vm4, %v2027_v54, %v2029_v13  ;;  %v2410_v53 = vmin.f32 %v2394_v52, 6.0 }
 0x17b   : > { %v2193_v2 = vsel %vm1586_vm3, %v2190_v16, %v2192_v33  ;;  %v1556_v45 = vmul.f32 %v4221_v60, %v3957_v46  ;;  %v4326_v24 = vmul.f32 %v4221_v60, %v3966_v17  ;;  %v1682_v55 = vmul.f32 %v4331_v32, %v3957_v46  ;;  %v4388_v33 = vld [vmem:[%s4601_s3 + $0xa] ss:$0 sm:$0xff] }
 0x17c   : > { %v2102_v42 = vadd.f32 %v2086_v9, %v2064_v41  ;;  %v1818_v48 = vadd.f32 %v1802_v8, %v1780_v3  ;;  %3076 = vmatprep.mubr.msk.f32.mxu1 %vm438_vm2, %v2410_v53  ;;  %v2317_v20 = vrot.slane %v2258_v39, 2  ;;  %v4338_v16 = vmul.f32 %v4331_v32, %v3966_v17 }
 0x17d   : > { %v1617_v54 = vrot.slane %v1556_v45, 1  ;;  %v1803_v7 = vmul.f32 %v4251_v58, %v4184_v63  ;;  %v1618_v9 = vrot.slane %v4326_v24, 1  ;;  %v1743_v21 = vrot.slane %v1682_v55, 2 }
 0x17e   : > { %v2227_v10 = vadd.f32 %v2183_v57, %v2102_v42  ;;  %v1943_v36 = vadd.f32 %v1905_v37, %v1818_v48  ;;  %v1744_v15 = vrot.slane %v4338_v16, 2  ;;  %v1846_v46 = vmul.f32 %v4236_v61, %v4184_v63 }
 0x17f   : > { %v4348_v30 = vmul.f32 %v4236_v61, %v4186_v12  ;;  %v1971_v26 = vmul.f32 %v4243_v1, %v4184_v63  ;;  %v1619_v47 = vsel %vm1586_vm3, %v1617_v54, %v1618_v9  ;;  %v4355_v57 = vmul.f32 %v4243_v1, %v4186_v12 }
 0x180   : > { %v2352_v44 = vadd.f32 %v2308_v50, %v2227_v10  ;;  %v2068_v19 = vadd.f32 %v2030_v49, %v1943_v36  ;;  %v1655_v27 = vadd.f32 %v1619_v47, %v1513_v35  ;;  %v1745_v51 = vsel %vm1712_vm4, %v1743_v21, %v1744_v15  ;;  %v4414_v21 = vld [vmem:[#allocation2 + $0xd0] sm:$0x3] }
 0x181   : > { %v1906_v14 = vrot.slane %v1846_v46, 1  ;;  %v1907_v0 = vrot.slane %v4348_v30, 1  ;;  %v2031_v8 = vrot.slane %v1971_v26, 2  ;;  %v2032_v50 = vrot.slane %v4355_v57, 2 }
 0x182   : > { %v2375_v25 = vadd.f32 %v3747_v56, %v2352_v44  ;;  %v2106_v18 = vadd.f32 %v2090_v5, %v2068_v19  ;;  %v2318_v6 = vsel %vm1712_vm4, %v2315_v43, %v2317_v20  ;;  %v1781_v23 = vadd.f32 %v1745_v51, %v1655_v27 }
 0x183   : > { %v1908_v28 = vsel %vm1586_vm3, %v1906_v14, %v1907_v0  ;;  %v2134_v29 = vmul.f32 %v4372_v38, %v4360_v40  ;;  %v2091_v43 = vmul.f32 %v4379_v59, %v4360_v40  ;;  %v2135_v13 = vmul.f32 %v4372_v38, %v4366_v34 }
 0x184   : > { %v2391_v62 = vmax.f32 %v2375_v25, 0.0  ;;  %v2231_v31 = vadd.f32 %v2193_v2, %v2106_v18  ;;  %v1819_v52 = vadd.f32 %v1803_v7, %v1781_v23  ;;  %v2259_v39 = vmul.f32 %v4388_v33, %v4360_v40 }
 0x185   : > { %v2194_v5 = vrot.slane %v2134_v29, 1  ;;  %v4394_v41 = vmul.f32 %v4388_v33, %v4366_v34  ;;  %v2033_v49 = vsel %vm1712_vm4, %v2031_v8, %v2032_v50  ;;  %v2195_v53 = vrot.slane %v2135_v13, 1  ;;  %v4447_v13 = vld [vmem:[%s4602_s4] ss:$0 sm:$0xff] }
 0x186   : > { %v2407_v3 = vmin.f32 %v2391_v62, 6.0  ;;  %v2356_v37 = vadd.f32 %v2318_v6, %v2231_v31  ;;  %v1944_v2 = vadd.f32 %v1908_v28, %v1819_v52  ;;  %v2319_v35 = vrot.slane %v2259_v39, 2 }
 0x187   : > { %v2320_v45 = vrot.slane %v4394_v41, 2  ;;  %v1558_v42 = vmul.f32 %v4221_v60, %v4057_v22  ;;  %v2196_v24 = vsel %vm1586_vm3, %v2194_v5, %v2195_v53  ;;  %v1514_v55 = vmul.f32 %v4281_v11, %v3966_v17 }
 0x188   : > { %3071 = vmatmul.mubr.msk.f32.gmra.mrb[16].mxu0 %vm438_vm2, %v2407_v3  ;;  %v2379_v48 = vadd.f32 %v3747_v56, %v2356_v37  ;;  %v1684_v20 = vmul.f32 %v4331_v32, %v4057_v22  ;;  %v2069_v54 = vadd.f32 %v2033_v49, %v1944_v2  ;;  %v1804_v7 = vmul.f32 %v4251_v58, %v4186_v12 }
 0x189   : > { %v1620_v16 = vrot.slane %v1558_v42, 1  ;;  %v1848_v10 = vmul.f32 %v4236_v61, %v4292_v4  ;;  %v2321_v56 = vsel %vm1712_vm4, %v2319_v35, %v2320_v45  ;;  %v1973_v17 = vmul.f32 %v4243_v1, %v4292_v4  ;;  %v1493_v35 = vld [vmem:[#allocation2 + $0xd8] sm:$0xff] }
 0x18a   : > { %v2395_v36 = vmax.f32 %v2379_v48, 0.0  ;;  %v1746_v46 = vrot.slane %v1684_v20, 2  ;;  %v2107_v22 = vadd.f32 %v2091_v43, %v2069_v54  ;;  %v2136_v44 = vmul.f32 %v4372_v38, %v4414_v21  ;;  %v1494_v20 = vld [vmem:[#allocation2 + $0xe0] sm:$0xff] }
 0x18b   : > { %v1621_v30 = vsel %vm1586_vm3, %v1618_v9, %v1620_v16  ;;  %v1909_v26 = vrot.slane %v1848_v10, 1  ;;  %v2034_v27 = vrot.slane %v1973_v17, 2  ;;  %v2092_v14 = vmul.f32 %v4379_v59, %v4366_v34 }
 0x18c   : > { %v2411_v19 = vmin.f32 %v2395_v36, 6.0  ;;  %v1656_v47 = vadd.f32 %v1621_v30, %v1514_v55  ;;  %v1747_v57 = vsel %vm1712_vm4, %v1744_v15, %v1746_v46  ;;  %v2232_v51 = vadd.f32 %v2196_v24, %v2107_v22 }
 0x18d   : > { %v2197_v25 = vrot.slane %v2136_v44, 1  ;;  %v2261_v18 = vmul.f32 %v4388_v33, %v4414_v21  ;;  %v1910_v8 = vsel %vm1586_vm3, %v1907_v0, %v1909_v26  ;;  %v2035_v6 = vsel %vm1712_vm4, %v2032_v50, %v2034_v27 }
 0x18e   : > { %3077 = vmatmul.mubr.msk.f32.gmra.mrb[12].mxu1 %vm438_vm2, %v2411_v19  ;;  %v1782_v9 = vadd.f32 %v1747_v57, %v1656_v47  ;;  %v1559_v23 = vmul.f32 %v4221_v60, %v4184_v63  ;;  %v2357_v15 = vadd.f32 %v2321_v56, %v2232_v51  ;;  %v1515_v29 = vmul.f32 %v4281_v11, %v4184_v63 }
 0x18f   : > { %v2198_v28 = vsel %vm1586_vm3, %v2195_v53, %v2197_v25  ;;  %v4436_v62 = vmul.f32 %v4221_v60, %v4186_v12  ;;  %v1685_v0 = vmul.f32 %v4331_v32, %v4184_v63  ;;  %v4442_v50 = vmul.f32 %v4331_v32, %v4186_v12 }
 0x190   : > { %v1820_v31 = vadd.f32 %v1804_v7, %v1782_v9  ;;  %v1622_v43 = vrot.slane %v1559_v23, 1  ;;  %v2380_v52 = vadd.f32 %v4447_v13, %v2357_v15  ;;  %v2322_v5 = vrot.slane %v2261_v18, 2 }
 0x191   : > { %v1623_v39 = vrot.slane %v4436_v62, 1  ;;  %v1805_v3 = vmul.f32 %v4251_v58, %v4360_v40  ;;  %v1748_v49 = vrot.slane %v1685_v0, 2  ;;  %v1749_v63 = vrot.slane %v4442_v50, 2  ;;  %v1495_v50 = vld [vmem:[#allocation2 + $0xe8] sm:$0x3] }
 0x192   : > { %v1945_v37 = vadd.f32 %v1910_v8, %v1820_v31  ;;  %v1849_v53 = vmul.f32 %v4236_v61, %v4360_v40  ;;  %v2396_v2 = vmax.f32 %v2380_v52, 0.0  ;;  %v1850_v48 = vmul.f32 %v4236_v61, %v4366_v34 }
 0x193   : > { %v1624_v42 = vsel %vm1586_vm3, %v1622_v43, %v1623_v39  ;;  %v1974_v24 = vmul.f32 %v4243_v1, %v4360_v40  ;;  %v1750_v16 = vsel %vm1712_vm4, %v1748_v49, %v1749_v63  ;;  %v1975_v56 = vmul.f32 %v4243_v1, %v4366_v34 }
 0x194   : > { %v2070_v55 = vadd.f32 %v2035_v6, %v1945_v37  ;;  %v1657_v54 = vadd.f32 %v1624_v42, %v1515_v29  ;;  %v1911_v7 = vrot.slane %v1849_v53, 1  ;;  %v2412_v10 = vmin.f32 %v2396_v2, 6.0 }
 0x195   : > { %v1912_v36 = vrot.slane %v1850_v48, 1  ;;  %v2036_v46 = vrot.slane %v1974_v24, 2  ;;  %v2323_v22 = vsel %vm1712_vm4, %v2320_v45, %v2322_v5  ;;  %v2137_v40 = vmul.f32 %v4372_v38, %v1493_v35 }
 0x196   : > { %v2108_v17 = vadd.f32 %v2092_v14, %v2070_v55  ;;  %v1783_v30 = vadd.f32 %v1750_v16, %v1657_v54  ;;  %3079 = vmatprep.mubr.msk.f32.mxu1 %vm438_vm2, %v2412_v10  ;;  %v2037_v44 = vrot.slane %v1975_v56, 2  ;;  %v2138_v19 = vmul.f32 %v4372_v38, %v1494_v20 }
 0x197   : > { %v1913_v26 = vsel %vm1586_vm3, %v1911_v7, %v1912_v36  ;;  %v2262_v47 = vmul.f32 %v4388_v33, %v1493_v35  ;;  %v2263_v51 = vmul.f32 %v4388_v33, %v1494_v20  ;;  %v2093_v45 = vmul.f32 %v4379_v59, %v1493_v35 }
 0x198   : > { %v2233_v57 = vadd.f32 %v2198_v28, %v2108_v17  ;;  %v1821_v27 = vadd.f32 %v1805_v3, %v1783_v30  ;;  %v2038_v41 = vsel %vm1712_vm4, %v2036_v46, %v2037_v44  ;;  %v2199_v14 = vrot.slane %v2137_v40, 1  ;;  %v2623_v40 = vld [vmem:[%s4506_s11 + $0x8] sm:$0xff] }
 0x199   : > { %v2200_v25 = vrot.slane %v2138_v19, 1  ;;  %v2324_v8 = vrot.slane %v2262_v47, 2  ;;  %v1561_v6 = vmul.f32 %v4221_v60, %v4292_v4  ;;  %v2325_v23 = vrot.slane %v2263_v51, 2  ;;  %v2625_v51 = vld [vmem:[%s4506_s11 + $0x18] sm:$0xff] }
 0x19a   : > { %v2358_v18 = vadd.f32 %v2323_v22, %v2233_v57  ;;  %v1946_v9 = vadd.f32 %v1913_v26, %v1821_v27  ;;  %v1516_v15 = vmul.f32 %v4281_v11, %v4186_v12  ;;  %v1687_v28 = vmul.f32 %v4331_v32, %v4292_v4 }
 0x19b   : > { %v1851_v29 = vmul.f32 %v4236_v61, %v4414_v21  ;;  %v1625_v43 = vrot.slane %v1561_v6, 1  ;;  %v2201_v0 = vsel %vm1586_vm3, %v2199_v14, %v2200_v25  ;;  %v1976_v60 = vmul.f32 %v4243_v1, %v4414_v21  ;;  %v2624_v14 = vld [vmem:[%s4506_s11 + $0x10] sm:$0xff]  ;;  %v2627_v6 = vld [vmem:[%s4506_s11 + $0x28] sm:$0xff] }
 0x19c   : > { %v2381_v62 = vadd.f32 %v4447_v13, %v2358_v18  ;;  %v2071_v31 = vadd.f32 %v2038_v41, %v1946_v9  ;;  %v1751_v52 = vrot.slane %v1687_v28, 2  ;;  %v2326_v4 = vsel %vm1712_vm4, %v2324_v8, %v2325_v23  ;;  %v2626_v28 = vld [vmem:[%s4506_s11 + $0x20] sm:$0xff] }
 0x19d   : > { %v1626_v12 = vsel %vm1586_vm3, %v1623_v39, %v1625_v43  ;;  %v1914_v11 = vrot.slane %v1851_v29, 1  ;;  %v1806_v37 = vmul.f32 %v4251_v58, %v4366_v34  ;;  %v2039_v2 = vrot.slane %v1976_v60, 2  ;;  %v2630_v60 = vld [vmem:[%s4506_s11 + $0x40] sm:$0xff] }
 0x19e   : > { %v2397_v5 = vmax.f32 %v2381_v62, 0.0  ;;  %v2109_v3 = vadd.f32 %v2093_v45, %v2071_v31  ;;  %v1658_v32 = vadd.f32 %v1626_v12, %v1516_v15  ;;  %v1752_v61 = vsel %vm1712_vm4, %v1749_v63, %v1751_v52 }
 0x19f   : > { %v2139_v35 = vmul.f32 %v4372_v38, %v1495_v50  ;;  %v1915_v21 = vsel %vm1586_vm3, %v1912_v36, %v1914_v11  ;;  %v2264_v39 = vmul.f32 %v4388_v33, %v1495_v50  ;;  %v2040_v63 = vsel %vm1712_vm4, %v2037_v44, %v2039_v2  ;;  %v2622_v44 = vld [vmem:[%s4506_s11] sm:$0xff] }
 0x1a0   : > { %v2413_v49 = vmin.f32 %v2397_v5, 6.0  ;;  %v2234_v53 = vadd.f32 %v2201_v0, %v2109_v3  ;;  %v1784_v42 = vadd.f32 %v1752_v61, %v1658_v32  ;;  %v2094_v34 = vmul.f32 %v4379_v59, %v1494_v20  ;;  %v4511_v59 = vld [vmem:[%s4604_s6] ss:$0 sm:$0xff]  ;;  %v2631_v0 = vld [vmem:[%s4506_s11 + $0x48] sm:$0xff] }
 0x1a1   : > { %v2202_v55 = vrot.slane %v2139_v35, 1  ;;  %v2327_v54 = vrot.slane %v2264_v39, 2  ;;  %v2632_v39 = vld [vmem:[%s4506_s11 + $0x50] sm:$0xff] }
 0x1a2   : > { %3080 = vmatmul.mubr.msk.f32.gmra.mrb[14].mxu1 %vm438_vm2, %v2413_v49  ;;  %v2359_v1 = vadd.f32 %v2326_v4, %v2234_v53  ;;  %v1822_v48 = vadd.f32 %v1806_v37, %v1784_v42  ;;  %v2629_v4 = vld [vmem:[%s4506_s11 + $0x38] sm:$0xff]  ;;  %v2628_v37 = vld [vmem:[%s4506_s11 + $0x30] sm:$0xff] }
 0x1a3   : > { %v2203_v10 = vsel %vm1586_vm3, %v2200_v25, %v2202_v55  ;;  %v2328_v33 = vsel %vm1712_vm4, %v2325_v23, %v2327_v54  ;;  %v2633_v42 = vld [vmem:[%s4506_s11 + $0x58] sm:$0xff]  ;;  %v2634_v54 = vld [vmem:[%s4506_s11 + $0x60] sm:$0xff] }
 0x1a4   : > { %v2382_v24 = vadd.f32 %v4447_v13, %v2359_v1  ;;  %v1947_v58 = vadd.f32 %v1915_v21, %v1822_v48 }
 0x1a6   : > { %v2398_v38 = vmax.f32 %v2382_v24, 0.0  ;;  %v2072_v16 = vadd.f32 %v2040_v63, %v1947_v58  ;;  %v2635_v58 = vld [vmem:[%s4506_s11 + $0x68] sm:$0xff] }
 0x1a8   : > { %v2414_v7 = vmin.f32 %v2398_v38, 6.0  ;;  %v2110_v36 = vadd.f32 %v2094_v34, %v2072_v16 }
 0x1aa   : > { %3082 = vmatprep.mubr.msk.f32.mxu1 %vm438_vm2, %v2414_v7  ;;  %v2235_v56 = vadd.f32 %v2203_v10, %v2110_v36 }
 0x1ac   : > { %v2360_v46 = vadd.f32 %v2328_v33, %v2235_v56  ;;  %v2637_v33 = vld [vmem:[%s4506_s11 + $0x78] sm:$0xff] }
 0x1ae   : > { %v2383_v17 = vadd.f32 %v4447_v13, %v2360_v46 }
 0x1b0   : > { %v2399_v22 = vmax.f32 %v2383_v17, 0.0  ;;  %v2636_v17 = vld [vmem:[%s4506_s11 + $0x70] sm:$0xff] }
 0x1b2   : > { %v2415_v30 = vmin.f32 %v2399_v22, 6.0 }
 0x1b4   : > { %3083 = vmatmul.mubr.msk.f32.gmra.mrb[16].mxu1 %vm438_vm2, %v2415_v30 }
 0x1fe   : > { %v3063_v20 = vpop.f32.mrb[10].mxu0 }
 0x1ff   : > { %v2547_v13 = vadd.f32 %v3063_v20, %v4511_v59  ;;  %v2541_v26 = vpop.f32.mrb[11].mxu0 }
 0x200   : > { %v2542_v19 = vadd.f32 %v4511_v59, %v2541_v26 }
 0x201   : > { %v2639_v47 = vadd.f32 %v2623_v40, %v2547_v13 }
 0x202   : > { %v2638_v57 = vadd.f32 %v2622_v44, %v2542_v19 }
 0x203   : > { %2655 = vst.msk [vmem:[%s4520_s18 + $0x8] sm:$0xff] %vm349_vm0, %v2639_v47 }
 0x204   : > { %2654 = vst.msk [vmem:[%s4520_s18] sm:$0xff] %vm349_vm0, %v2638_v57 }
 0x216   : > { %v3066_v27 = vpop.f32.mrb[12].mxu0 }
 0x217   : > { %v2557_v41 = vadd.f32 %v3066_v27, %v4511_v59  ;;  %v2551_v45 = vpop.f32.mrb[13].mxu0 }
 0x218   : > { %v2552_v25 = vadd.f32 %v4511_v59, %v2551_v45 }
 0x219   : > { %v2641_v18 = vadd.f32 %v2625_v51, %v2557_v41 }
 0x21a   : > { %v2640_v9 = vadd.f32 %v2624_v14, %v2552_v25 }
 0x21b   : > { %2657 = vst.msk [vmem:[%s4520_s18 + $0x18] sm:$0xff] %vm349_vm0, %v2641_v18 }
 0x21c   : > { %2656 = vst.msk [vmem:[%s4520_s18 + $0x10] sm:$0xff] %vm349_vm0, %v2640_v9 }
 0x234   : > { %v3069_v8 = vpop.f32.mrb[14].mxu0 }
 0x235   : > { %v2567_v23 = vadd.f32 %v3069_v8, %v4511_v59  ;;  %v2561_v15 = vpop.f32.mrb[15].mxu0 }
 0x236   : > { %v2562_v29 = vadd.f32 %v4511_v59, %v2561_v15 }
 0x237   : > { %v2643_v62 = vadd.f32 %v2627_v6, %v2567_v23 }
 0x238   : > { %v2642_v31 = vadd.f32 %v2626_v28, %v2562_v29 }
 0x239   : > { %2659 = vst.msk [vmem:[%s4520_s18 + $0x28] sm:$0xff] %vm349_vm0, %v2643_v62 }
 0x23a   : > { %2658 = vst.msk [vmem:[%s4520_s18 + $0x20] sm:$0xff] %vm349_vm0, %v2642_v31 }
 0x23b   : > { %v3075_v43 = vpop.f32.mrb[10].mxu1 }
 0x23c   : > { %v2587_v50 = vadd.f32 %v3075_v43, %v4511_v59  ;;  %v2581_v52 = vpop.f32.mrb[11].mxu1 }
 0x23d   : > { %v2582_v5 = vadd.f32 %v4511_v59, %v2581_v52 }
 0x23e   : > { %v2647_v3 = vadd.f32 %v2631_v0, %v2587_v50 }
 0x23f   : > { %v2646_v12 = vadd.f32 %v2630_v60, %v2582_v5 }
 0x240   : > { %2663 = vst.msk [vmem:[%s4520_s18 + $0x48] sm:$0xff] %vm349_vm0, %v2647_v3 }
 0x241   : > { %2662 = vst.msk [vmem:[%s4520_s18 + $0x40] sm:$0xff] %vm349_vm0, %v2646_v12 }
 0x25b   : > { %v3072_v11 = vpop.f32.mrb[16].mxu0 }
 0x25c   : > { %v2577_v32 = vadd.f32 %v3072_v11, %v4511_v59  ;;  %v2571_v61 = vpop.f32.mrb[17].mxu0 }
 0x25d   : > { %v2572_v49 = vadd.f32 %v4511_v59, %v2571_v61 }
 0x25e   : > { %v2645_v53 = vadd.f32 %v2629_v4, %v2577_v32 }
 0x25f   : > { %v2644_v2 = vadd.f32 %v2628_v37, %v2572_v49 }
 0x260   : > { %2661 = vst.msk [vmem:[%s4520_s18 + $0x38] sm:$0xff] %vm349_vm0, %v2645_v53 }
 0x261   : > { %v3078_v35 = vpop.f32.mrb[12].mxu1  ;;  %2660 = vst.msk [vmem:[%s4520_s18 + $0x30] sm:$0xff] %vm349_vm0, %v2644_v2 }
 0x262   : > { %v2597_v1 = vadd.f32 %v3078_v35, %v4511_v59  ;;  %v2591_v21 = vpop.f32.mrb[13].mxu1 }
 0x263   : > { %v2592_v48 = vadd.f32 %v4511_v59, %v2591_v21 }
 0x264   : > { %v2649_v24 = vadd.f32 %v2633_v42, %v2597_v1 }
 0x265   : > { %v2648_v63 = vadd.f32 %v2632_v39, %v2592_v48 }
 0x266   : > { %2665 = vst.msk [vmem:[%s4520_s18 + $0x58] sm:$0xff] %vm349_vm0, %v2649_v24 }
 0x267   : > { %2664 = vst.msk [vmem:[%s4520_s18 + $0x50] sm:$0xff] %vm349_vm0, %v2648_v63 }
 0x275   : > { %v3081_v55 = vpop.f32.mrb[14].mxu1 }
 0x276   : > { %v2607_v34 = vadd.f32 %v3081_v55, %v4511_v59  ;;  %v2601_v38 = vpop.f32.mrb[15].mxu1 }
 0x277   : > { %v2602_v16 = vadd.f32 %v4511_v59, %v2601_v38 }
 0x278   : > { %v2651_v7 = vadd.f32 %v2635_v58, %v2607_v34 }
 0x279   : > { %v2650_v10 = vadd.f32 %v2634_v54, %v2602_v16 }
 0x27a   : > { %2667 = vst.msk [vmem:[%s4520_s18 + $0x68] sm:$0xff] %vm349_vm0, %v2651_v7 }
 0x27b   : > { %2666 = vst.msk [vmem:[%s4520_s18 + $0x60] sm:$0xff] %vm349_vm0, %v2650_v10 }
 0x287   : > { %v3084_v36 = vpop.f32.mrb[16].mxu1 }
 0x288   : > { %v2617_v56 = vadd.f32 %v3084_v36, %v4511_v59  ;;  %v2611_v46 = vpop.f32.mrb[17].mxu1 }
 0x289   : > { %v2612_v22 = vadd.f32 %v4511_v59, %v2611_v46 }
 0x28a   : > { %v2653_v30 = vadd.f32 %v2637_v33, %v2617_v56 }
 0x28b   : > { %v2652_v20 = vadd.f32 %v2636_v17, %v2612_v22 }
 0x28c   : > { %2669 = vst.msk [vmem:[%s4520_s18 + $0x78] sm:$0xff] %vm349_vm0, %v2653_v30 }
 0x28d   : > { %2668 = vst.msk [vmem:[%s4520_s18 + $0x70] sm:$0xff] %vm349_vm0, %v2652_v20 }
 0x28e PF: > { %s17_s28 = sadd.s32 1, %s3186_s28   ;;  %s4624_s15 = sld [smem:[#allocation3_spill]] }
 0x28f   : > { %p14_p3 = scmp.ge.s32.totalorder %s17_s28, 6   ;;  %s4625_s24 = smov %s3178_s26 }
 0x290   : > { %s4626_s25 = smov %s3182_s27  ;;  %s4627_s26 = smov %s4630_s29 }
 0x291   :  { %16 = sbr.rel (!%p14_p3) target bundleno = 4 (0x4), region = 100 }
 0x294   : > { %s4628_s27 = smov %s4624_s15 }

</bundles_post_ra>
